<compile_context>
chip_gen: v7x
topology: tpu7x:2x2x1
jax: 0.10.0
libtpu: 0.0.40
codegen_flags: <defaults>
</compile_context>

<pallas_src>
import jax
import jax.numpy as jnp
from jax.experimental import pallas as pl
from jax.experimental.pallas import tpu as pltpu


# ---------------------------------------------------------------------------
# Pallas kernel: one (TH, W, co_t) output tile of conv3x3 + BN + ReLU
# ---------------------------------------------------------------------------
def _conv3x3_bn_relu_kernel(xa_ref, xb0_ref, xb1_ref, w_ref, s_ref, b_ref, o_ref):
    # xa_ref  : (1, TH, W+2, Cin) bf16 -- padded rows [r*TH, r*TH+TH)
    # xb0_ref : (1, 1,  W+2, Cin) bf16 -- padded row   r*TH+TH      (halo)
    # xb1_ref : (1, 1,  W+2, Cin) bf16 -- padded row   r*TH+TH+1    (halo)
    # w_ref   : (3, 3, Cin, co_t) bf16 -- conv weights (HWIO)
    # s_ref/b_ref : (1, co_t) f32      -- folded BN scale / bias
    # o_ref   : (1, TH, W, co_t) bf16  -- output rows [r*TH, r*TH+TH)
    th = o_ref.shape[1]
    wdim = o_ref.shape[2]
    co_t = o_ref.shape[3]

    # Assemble the (TH+2, W+2, Cin) halo window for this row tile in VMEM.
    win = jnp.concatenate([xa_ref[0], xb0_ref[0], xb1_ref[0]], axis=0)

    acc = jnp.zeros((th * wdim, co_t), jnp.float32)
    for kh in range(3):
        rows = win[kh:kh + th]                                   # (TH, W+2, Cin)
        for kw in range(3):
            slab = rows[:, kw:kw + wdim, :].reshape(th * wdim, -1)
            acc = acc + jnp.dot(slab, w_ref[kh, kw],
                                preferred_element_type=jnp.float32)

    y = acc * s_ref[...] + b_ref[...]                            # fused BN epilogue
    y = jnp.maximum(y, 0.0)                                      # fused ReLU
    o_ref[0] = y.reshape(th, wdim, co_t).astype(o_ref.dtype)     # bf16 store


# ---------------------------------------------------------------------------
# Parameter preparation (hoisted out of the forward path)
# ---------------------------------------------------------------------------
def fold_batchnorm(gamma, beta, running_mean, running_var, eps=1e-5):
    scale = gamma / jnp.sqrt(running_var + eps)
    bias = beta - running_mean * scale
    return scale, bias


def prepare_conv_block_params(conv_w_oihw, bn_params):
    # TODO(synk): training-mode BatchNorm (batch statistics + running-stat
    # update) not implemented; BN is applied in eval mode with running stats
    # folded into a per-channel scale/bias.
    gamma, beta, mean, var = bn_params
    scale, bias = fold_batchnorm(gamma, beta, mean, var)
    w_hwio = jnp.transpose(conv_w_oihw, (2, 3, 1, 0)).astype(jnp.bfloat16)
    cout = conv_w_oihw.shape[0]
    return {
        "w": w_hwio,                                             # (3, 3, Cin, Cout)
        "scale": scale.reshape(1, cout).astype(jnp.float32),
        "bias": bias.reshape(1, cout).astype(jnp.float32),
    }


def _cout_tile(cout):
    # Prefer lane-dense (>=128) output tiles; 256 feeds v6e/v7x MXU natively.
    # (On v5e, 128 is the sweet spot -- 256 only costs accumulator pressure.)
    if cout > 256 and cout % 256 == 0:
        return 256
    if cout > 128 and cout % 128 == 0:
        return 128
    return cout


def _row_tile(h, w):
    # Pick TH | H so M = TH*W lands in the few-hundreds (well-fed MXU) while
    # keeping the per-step window / f32 accumulator small enough to double-
    # buffer within v7x's 64 MiB VMEM.
    for th in (32, 16, 8, 4, 2, 1):
        if h % th == 0 and th * w <= 2048:
            return th
    return 1


# ---------------------------------------------------------------------------
# ConvBlock forward (NCHW in / NCHW out, like the PyTorch module)
# ---------------------------------------------------------------------------
def conv_block_forward(prep, x_nchw):
    w = prep["w"]                                                # (3, 3, Cin, Cout) bf16
    scale, bias = prep["scale"], prep["bias"]                    # (1, Cout) f32
    kh, kw, cin, cout = w.shape
    assert kh == 3 and kw == 3

    n, cin_x, h, wdim = x_nchw.shape
    assert cin_x == cin

    # NCHW -> NHWC + bf16 cast + conv padding=1: XLA fuses these into a single
    # relayout pass (the layout change is needed anyway, so no separate pad pass).
    x = jnp.transpose(x_nchw, (0, 2, 3, 1)).astype(jnp.bfloat16)
    xp = jnp.pad(x, ((0, 0), (1, 1), (1, 1), (0, 0)))            # (N, H+2, W+2, Cin)

    co_t = _cout_tile(cout)
    th = _row_tile(h, wdim)
    n_co = cout // co_t
    n_h = h // th
    grid = (n, n_co, n_h)

    out = pl.pallas_call(
        _conv3x3_bn_relu_kernel,
        out_shape=jax.ShapeDtypeStruct((n, h, wdim, cout), jnp.bfloat16),
        grid_spec=pltpu.PrefetchScalarGridSpec(
            num_scalar_prefetch=0,
            grid=grid,
            in_specs=[
                # main (TH, W+2, Cin) window for row tile r
                pl.BlockSpec((1, th, wdim + 2, cin),
                             lambda i, j, r: (i, r, 0, 0)),
                # two 1-row halo windows (rows r*TH+TH and r*TH+TH+1 of xp)
                pl.BlockSpec((1, 1, wdim + 2, cin),
                             lambda i, j, r: (i, (r + 1) * th, 0, 0)),
                pl.BlockSpec((1, 1, wdim + 2, cin),
                             lambda i, j, r: (i, (r + 1) * th + 1, 0, 0)),
                # weights / BN params: index independent of r -> stay resident
                # across the whole row sweep (fetched once when n_co == 1)
                pl.BlockSpec((3, 3, cin, co_t), lambda i, j, r: (0, 0, 0, j)),
                pl.BlockSpec((1, co_t), lambda i, j, r: (0, j)),
                pl.BlockSpec((1, co_t), lambda i, j, r: (0, j)),
            ],
            out_specs=pl.BlockSpec((1, th, wdim, co_t),
                                   lambda i, j, r: (i, r, 0, j)),
        ),
        compiler_params=pltpu.CompilerParams(
            dimension_semantics=("parallel", "parallel", "parallel"),
            vmem_limit_bytes=32 * 1024 * 1024),
    )(xp, xp, xp, w, scale, bias)

    # Back to NCHW + f32 (fused transpose+convert pass).
    return jnp.transpose(out, (0, 3, 1, 2)).astype(jnp.float32)


# ---------------------------------------------------------------------------
# Demo / self-check
# ---------------------------------------------------------------------------
if __name__ == "__main__":
    key = jax.random.PRNGKey(0)
    k1, k2, k3, k4, k5, k6 = jax.random.split(key, 6)

    N, CIN, H, W = 2, 16, 16, 16
    COUT = 64

    x = jax.random.normal(k1, (N, CIN, H, W), jnp.float32)
    conv_w = jax.random.normal(k2, (COUT, CIN, 3, 3), jnp.float32) * (2.0 / (CIN * 9)) ** 0.5
    bn = (
        1.0 + 0.1 * jax.random.normal(k3, (COUT,), jnp.float32),              # gamma
        0.1 * jax.random.normal(k4, (COUT,), jnp.float32),                    # beta
        0.1 * jax.random.normal(k5, (COUT,), jnp.float32),                    # running_mean
        jax.random.uniform(k6, (COUT,), jnp.float32, minval=0.5, maxval=1.5), # running_var
    )

    prep = prepare_conv_block_params(conv_w, bn)
    fwd = jax.jit(conv_block_forward)
    y = jax.block_until_ready(fwd(prep, x))

    assert y.shape == (N, COUT, H, W), y.shape
    assert bool(jnp.all(jnp.isfinite(y)))

    # f32 reference: conv + eval-mode BN + ReLU
    ref = jax.lax.conv_general_dilated(
        x, conv_w, window_strides=(1, 1), padding=((1, 1), (1, 1)),
        dimension_numbers=("NCHW", "OIHW", "NCHW"),
        precision=jax.lax.Precision.HIGHEST)
    gamma, beta, mean, var = bn
    r_scale = gamma / jnp.sqrt(var + 1e-5)
    r_bias = beta - mean * r_scale
    ref = jnp.maximum(ref * r_scale[None, :, None, None] + r_bias[None, :, None, None], 0.0)

    err = float(jnp.max(jnp.abs(y - ref)))
    denom = float(jnp.max(jnp.abs(ref))) + 1e-6
    assert err / denom < 0.03, (err, denom)   # bf16-MXU / f32-acc tolerance

    print("KERNEL_OK")
</pallas_src>

<mosaic_0001>
module attributes {stable_mosaic.version = 11 : i64} {
  func.func @_conv3x3_bn_relu_kernel(%arg0: i32, %arg1: i32, %arg2: i32, %arg3: memref<1x16x18x16xbf16, #tpu.memory_space<vmem>>, %arg4: memref<1x1x18x16xbf16, #tpu.memory_space<vmem>>, %arg5: memref<1x1x18x16xbf16, #tpu.memory_space<vmem>>, %arg6: memref<3x3x16x64xbf16, #tpu.memory_space<vmem>>, %arg7: memref<1x64xf32, #tpu.memory_space<vmem>>, %arg8: memref<1x64xf32, #tpu.memory_space<vmem>>, %arg9: memref<1x16x16x64xbf16, #tpu.memory_space<vmem>>) attributes {dimension_semantics = [#tpu.dimension_semantics<parallel>, #tpu.dimension_semantics<parallel>, #tpu.dimension_semantics<parallel>], iteration_bounds = array<i64: 2, 1, 1>, scalar_prefetch = 0 : i64, scratch_operands = 0 : i64, tpu.core_type = #tpu.core_type<tc>, window_params = [{transform_indices = @transform_0, window_bounds = array<i64: 1, 16, 18, 16>}, {transform_indices = @transform_1, window_bounds = array<i64: 1, 1, 18, 16>}, {transform_indices = @transform_2, window_bounds = array<i64: 1, 1, 18, 16>}, {transform_indices = @transform_3, window_bounds = array<i64: 3, 3, 16, 64>}, {transform_indices = @transform_4, window_bounds = array<i64: 1, 64>}, {transform_indices = @transform_5, window_bounds = array<i64: 1, 64>}, {transform_indices = @transform_6, window_bounds = array<i64: 1, 16, 16, 64>}]} {
    %c0 = arith.constant 0 : index
    %c0_0 = arith.constant 0 : index
    %c0_1 = arith.constant 0 : index
    %c0_2 = arith.constant 0 : index
    %0 = vector.load %arg3[%c0, %c0_0, %c0_1, %c0_2] : memref<1x16x18x16xbf16, #tpu.memory_space<vmem>>, vector<1x16x18x16xbf16>
    %1 = vector.shape_cast %0 : vector<1x16x18x16xbf16> to vector<16x18x16xbf16>
    %c0_3 = arith.constant 0 : index
    %c0_4 = arith.constant 0 : index
    %c0_5 = arith.constant 0 : index
    %c0_6 = arith.constant 0 : index
    %2 = vector.load %arg4[%c0_3, %c0_4, %c0_5, %c0_6] : memref<1x1x18x16xbf16, #tpu.memory_space<vmem>>, vector<1x1x18x16xbf16>
    %3 = vector.shape_cast %2 : vector<1x1x18x16xbf16> to vector<1x18x16xbf16>
    %c0_7 = arith.constant 0 : index
    %c0_8 = arith.constant 0 : index
    %c0_9 = arith.constant 0 : index
    %c0_10 = arith.constant 0 : index
    %4 = vector.load %arg5[%c0_7, %c0_8, %c0_9, %c0_10] : memref<1x1x18x16xbf16, #tpu.memory_space<vmem>>, vector<1x1x18x16xbf16>
    %5 = vector.shape_cast %4 : vector<1x1x18x16xbf16> to vector<1x18x16xbf16>
    %6 = tpu.concatenate %1, %3, %5 in 0 : vector<16x18x16xbf16>, vector<1x18x16xbf16>, vector<1x18x16xbf16> -> vector<18x18x16xbf16>
    %cst = arith.constant 0.000000e+00 : f32
    %7 = vector.broadcast %cst : f32 to vector<256x64xf32>
    %8 = vector.extract_strided_slice %6 {offsets = [0, 0, 0], sizes = [16, 18, 16], strides = [1, 1, 1]} : vector<18x18x16xbf16> to vector<16x18x16xbf16>
    %9 = vector.extract_strided_slice %8 {offsets = [0, 0, 0], sizes = [16, 16, 16], strides = [1, 1, 1]} : vector<16x18x16xbf16> to vector<16x16x16xbf16>
    %10 = vector.shape_cast %9 : vector<16x16x16xbf16> to vector<256x16xbf16>
    %c0_11 = arith.constant 0 : index
    %c0_12 = arith.constant 0 : index
    %c0_13 = arith.constant 0 : index
    %c0_14 = arith.constant 0 : index
    %11 = vector.load %arg6[%c0_11, %c0_12, %c0_13, %c0_14] : memref<3x3x16x64xbf16, #tpu.memory_space<vmem>>, vector<1x1x16x64xbf16>
    %12 = vector.shape_cast %11 : vector<1x1x16x64xbf16> to vector<16x64xbf16>
    %cst_15 = arith.constant dense<0.000000e+00> : vector<256x64xf32>
    %13 = tpu.matmul %10, %12, %cst_15 {dimension_numbers = #tpu.dot_dimension_numbers<[1], [0], [0], [1], [0, 0, 1, 1], [], []>} : vector<256x16xbf16>, vector<16x64xbf16>, vector<256x64xf32> -> vector<256x64xf32>
    %14 = arith.addf %7, %13 : vector<256x64xf32>
    %15 = vector.extract_strided_slice %8 {offsets = [0, 1, 0], sizes = [16, 16, 16], strides = [1, 1, 1]} : vector<16x18x16xbf16> to vector<16x16x16xbf16>
    %16 = vector.shape_cast %15 : vector<16x16x16xbf16> to vector<256x16xbf16>
    %c0_16 = arith.constant 0 : index
    %c1 = arith.constant 1 : index
    %c0_17 = arith.constant 0 : index
    %c0_18 = arith.constant 0 : index
    %17 = vector.load %arg6[%c0_16, %c1, %c0_17, %c0_18] : memref<3x3x16x64xbf16, #tpu.memory_space<vmem>>, vector<1x1x16x64xbf16>
    %18 = vector.shape_cast %17 : vector<1x1x16x64xbf16> to vector<16x64xbf16>
    %cst_19 = arith.constant dense<0.000000e+00> : vector<256x64xf32>
    %19 = tpu.matmul %16, %18, %cst_19 {dimension_numbers = #tpu.dot_dimension_numbers<[1], [0], [0], [1], [0, 0, 1, 1], [], []>} : vector<256x16xbf16>, vector<16x64xbf16>, vector<256x64xf32> -> vector<256x64xf32>
    %20 = arith.addf %14, %19 : vector<256x64xf32>
    %21 = vector.extract_strided_slice %8 {offsets = [0, 2, 0], sizes = [16, 16, 16], strides = [1, 1, 1]} : vector<16x18x16xbf16> to vector<16x16x16xbf16>
    %22 = vector.shape_cast %21 : vector<16x16x16xbf16> to vector<256x16xbf16>
    %c0_20 = arith.constant 0 : index
    %c2 = arith.constant 2 : index
    %c0_21 = arith.constant 0 : index
    %c0_22 = arith.constant 0 : index
    %23 = vector.load %arg6[%c0_20, %c2, %c0_21, %c0_22] : memref<3x3x16x64xbf16, #tpu.memory_space<vmem>>, vector<1x1x16x64xbf16>
    %24 = vector.shape_cast %23 : vector<1x1x16x64xbf16> to vector<16x64xbf16>
    %cst_23 = arith.constant dense<0.000000e+00> : vector<256x64xf32>
    %25 = tpu.matmul %22, %24, %cst_23 {dimension_numbers = #tpu.dot_dimension_numbers<[1], [0], [0], [1], [0, 0, 1, 1], [], []>} : vector<256x16xbf16>, vector<16x64xbf16>, vector<256x64xf32> -> vector<256x64xf32>
    %26 = arith.addf %20, %25 : vector<256x64xf32>
    %27 = vector.extract_strided_slice %6 {offsets = [1, 0, 0], sizes = [16, 18, 16], strides = [1, 1, 1]} : vector<18x18x16xbf16> to vector<16x18x16xbf16>
    %28 = vector.extract_strided_slice %27 {offsets = [0, 0, 0], sizes = [16, 16, 16], strides = [1, 1, 1]} : vector<16x18x16xbf16> to vector<16x16x16xbf16>
    %29 = vector.shape_cast %28 : vector<16x16x16xbf16> to vector<256x16xbf16>
    %c1_24 = arith.constant 1 : index
    %c0_25 = arith.constant 0 : index
    %c0_26 = arith.constant 0 : index
    %c0_27 = arith.constant 0 : index
    %30 = vector.load %arg6[%c1_24, %c0_25, %c0_26, %c0_27] : memref<3x3x16x64xbf16, #tpu.memory_space<vmem>>, vector<1x1x16x64xbf16>
    %31 = vector.shape_cast %30 : vector<1x1x16x64xbf16> to vector<16x64xbf16>
    %cst_28 = arith.constant dense<0.000000e+00> : vector<256x64xf32>
    %32 = tpu.matmul %29, %31, %cst_28 {dimension_numbers = #tpu.dot_dimension_numbers<[1], [0], [0], [1], [0, 0, 1, 1], [], []>} : vector<256x16xbf16>, vector<16x64xbf16>, vector<256x64xf32> -> vector<256x64xf32>
    %33 = arith.addf %26, %32 : vector<256x64xf32>
    %34 = vector.extract_strided_slice %27 {offsets = [0, 1, 0], sizes = [16, 16, 16], strides = [1, 1, 1]} : vector<16x18x16xbf16> to vector<16x16x16xbf16>
    %35 = vector.shape_cast %34 : vector<16x16x16xbf16> to vector<256x16xbf16>
    %c1_29 = arith.constant 1 : index
    %c1_30 = arith.constant 1 : index
    %c0_31 = arith.constant 0 : index
    %c0_32 = arith.constant 0 : index
    %36 = vector.load %arg6[%c1_29, %c1_30, %c0_31, %c0_32] : memref<3x3x16x64xbf16, #tpu.memory_space<vmem>>, vector<1x1x16x64xbf16>
    %37 = vector.shape_cast %36 : vector<1x1x16x64xbf16> to vector<16x64xbf16>
    %cst_33 = arith.constant dense<0.000000e+00> : vector<256x64xf32>
    %38 = tpu.matmul %35, %37, %cst_33 {dimension_numbers = #tpu.dot_dimension_numbers<[1], [0], [0], [1], [0, 0, 1, 1], [], []>} : vector<256x16xbf16>, vector<16x64xbf16>, vector<256x64xf32> -> vector<256x64xf32>
    %39 = arith.addf %33, %38 : vector<256x64xf32>
    %40 = vector.extract_strided_slice %27 {offsets = [0, 2, 0], sizes = [16, 16, 16], strides = [1, 1, 1]} : vector<16x18x16xbf16> to vector<16x16x16xbf16>
    %41 = vector.shape_cast %40 : vector<16x16x16xbf16> to vector<256x16xbf16>
    %c1_34 = arith.constant 1 : index
    %c2_35 = arith.constant 2 : index
    %c0_36 = arith.constant 0 : index
    %c0_37 = arith.constant 0 : index
    %42 = vector.load %arg6[%c1_34, %c2_35, %c0_36, %c0_37] : memref<3x3x16x64xbf16, #tpu.memory_space<vmem>>, vector<1x1x16x64xbf16>
    %43 = vector.shape_cast %42 : vector<1x1x16x64xbf16> to vector<16x64xbf16>
    %cst_38 = arith.constant dense<0.000000e+00> : vector<256x64xf32>
    %44 = tpu.matmul %41, %43, %cst_38 {dimension_numbers = #tpu.dot_dimension_numbers<[1], [0], [0], [1], [0, 0, 1, 1], [], []>} : vector<256x16xbf16>, vector<16x64xbf16>, vector<256x64xf32> -> vector<256x64xf32>
    %45 = arith.addf %39, %44 : vector<256x64xf32>
    %46 = vector.extract_strided_slice %6 {offsets = [2, 0, 0], sizes = [16, 18, 16], strides = [1, 1, 1]} : vector<18x18x16xbf16> to vector<16x18x16xbf16>
    %47 = vector.extract_strided_slice %46 {offsets = [0, 0, 0], sizes = [16, 16, 16], strides = [1, 1, 1]} : vector<16x18x16xbf16> to vector<16x16x16xbf16>
    %48 = vector.shape_cast %47 : vector<16x16x16xbf16> to vector<256x16xbf16>
    %c2_39 = arith.constant 2 : index
    %c0_40 = arith.constant 0 : index
    %c0_41 = arith.constant 0 : index
    %c0_42 = arith.constant 0 : index
    %49 = vector.load %arg6[%c2_39, %c0_40, %c0_41, %c0_42] : memref<3x3x16x64xbf16, #tpu.memory_space<vmem>>, vector<1x1x16x64xbf16>
    %50 = vector.shape_cast %49 : vector<1x1x16x64xbf16> to vector<16x64xbf16>
    %cst_43 = arith.constant dense<0.000000e+00> : vector<256x64xf32>
    %51 = tpu.matmul %48, %50, %cst_43 {dimension_numbers = #tpu.dot_dimension_numbers<[1], [0], [0], [1], [0, 0, 1, 1], [], []>} : vector<256x16xbf16>, vector<16x64xbf16>, vector<256x64xf32> -> vector<256x64xf32>
    %52 = arith.addf %45, %51 : vector<256x64xf32>
    %53 = vector.extract_strided_slice %46 {offsets = [0, 1, 0], sizes = [16, 16, 16], strides = [1, 1, 1]} : vector<16x18x16xbf16> to vector<16x16x16xbf16>
    %54 = vector.shape_cast %53 : vector<16x16x16xbf16> to vector<256x16xbf16>
    %c2_44 = arith.constant 2 : index
    %c1_45 = arith.constant 1 : index
    %c0_46 = arith.constant 0 : index
    %c0_47 = arith.constant 0 : index
    %55 = vector.load %arg6[%c2_44, %c1_45, %c0_46, %c0_47] : memref<3x3x16x64xbf16, #tpu.memory_space<vmem>>, vector<1x1x16x64xbf16>
    %56 = vector.shape_cast %55 : vector<1x1x16x64xbf16> to vector<16x64xbf16>
    %cst_48 = arith.constant dense<0.000000e+00> : vector<256x64xf32>
    %57 = tpu.matmul %54, %56, %cst_48 {dimension_numbers = #tpu.dot_dimension_numbers<[1], [0], [0], [1], [0, 0, 1, 1], [], []>} : vector<256x16xbf16>, vector<16x64xbf16>, vector<256x64xf32> -> vector<256x64xf32>
    %58 = arith.addf %52, %57 : vector<256x64xf32>
    %59 = vector.extract_strided_slice %46 {offsets = [0, 2, 0], sizes = [16, 16, 16], strides = [1, 1, 1]} : vector<16x18x16xbf16> to vector<16x16x16xbf16>
    %60 = vector.shape_cast %59 : vector<16x16x16xbf16> to vector<256x16xbf16>
    %c2_49 = arith.constant 2 : index
    %c2_50 = arith.constant 2 : index
    %c0_51 = arith.constant 0 : index
    %c0_52 = arith.constant 0 : index
    %61 = vector.load %arg6[%c2_49, %c2_50, %c0_51, %c0_52] : memref<3x3x16x64xbf16, #tpu.memory_space<vmem>>, vector<1x1x16x64xbf16>
    %62 = vector.shape_cast %61 : vector<1x1x16x64xbf16> to vector<16x64xbf16>
    %cst_53 = arith.constant dense<0.000000e+00> : vector<256x64xf32>
    %63 = tpu.matmul %60, %62, %cst_53 {dimension_numbers = #tpu.dot_dimension_numbers<[1], [0], [0], [1], [0, 0, 1, 1], [], []>} : vector<256x16xbf16>, vector<16x64xbf16>, vector<256x64xf32> -> vector<256x64xf32>
    %64 = arith.addf %58, %63 : vector<256x64xf32>
    %c0_54 = arith.constant 0 : index
    %c0_55 = arith.constant 0 : index
    %65 = vector.load %arg7[%c0_54, %c0_55] : memref<1x64xf32, #tpu.memory_space<vmem>>, vector<1x64xf32>
    %66 = vector.broadcast %65 : vector<1x64xf32> to vector<256x64xf32>
    %67 = arith.mulf %64, %66 : vector<256x64xf32>
    %c0_56 = arith.constant 0 : index
    %c0_57 = arith.constant 0 : index
    %68 = vector.load %arg8[%c0_56, %c0_57] : memref<1x64xf32, #tpu.memory_space<vmem>>, vector<1x64xf32>
    %69 = vector.broadcast %68 : vector<1x64xf32> to vector<256x64xf32>
    %70 = arith.addf %67, %69 : vector<256x64xf32>
    %cst_58 = arith.constant 0.000000e+00 : f32
    %71 = vector.broadcast %cst_58 : f32 to vector<256x64xf32>
    %72 = arith.maximumf %70, %71 : vector<256x64xf32>
    %73 = vector.shape_cast %72 : vector<256x64xf32> to vector<16x16x64xf32>
    %74 = arith.truncf %73 : vector<16x16x64xf32> to vector<16x16x64xbf16>
    %c0_59 = arith.constant 0 : index
    %c0_60 = arith.constant 0 : index
    %c0_61 = arith.constant 0 : index
    %c0_62 = arith.constant 0 : index
    %75 = vector.load %arg9[%c0_59, %c0_60, %c0_61, %c0_62] : memref<1x16x16x64xbf16, #tpu.memory_space<vmem>>, vector<1x16x16x64xbf16>
    %76 = vector.shape_cast %75 : vector<1x16x16x64xbf16> to vector<16x16x64xbf16>
    %77 = vector.shape_cast %74 : vector<16x16x64xbf16> to vector<1x16x16x64xbf16>
    tpu.vector_store %arg9[%c0_59, %c0_60, %c0_61, %c0_62], %77 {strides = array<i32>} : memref<1x16x16x64xbf16, #tpu.memory_space<vmem>>, vector<1x16x16x64xbf16>,
    return
  }
  func.func @transform_0(%arg0: i32, %arg1: i32, %arg2: i32) -> (i32, i32, i32, i32) {
    %c0_i32 = arith.constant 0 : i32
    %c0_i32_0 = arith.constant 0 : i32
    %c0_i32_1 = arith.constant 0 : i32
    return %arg0, %arg2, %c0_i32, %c0_i32_0 : i32, i32, i32, i32
  }
  func.func @transform_1(%arg0: i32, %arg1: i32, %arg2: i32) -> (i32, i32, i32, i32) {
    %c1_i32 = arith.constant 1 : i32
    %0 = arith.addi %arg2, %c1_i32 : i32
    %c16_i32 = arith.constant 16 : i32
    %1 = arith.muli %0, %c16_i32 : i32
    %c0_i32 = arith.constant 0 : i32
    %c0_i32_0 = arith.constant 0 : i32
    %c0_i32_1 = arith.constant 0 : i32
    return %arg0, %1, %c0_i32, %c0_i32_0 : i32, i32, i32, i32
  }
  func.func @transform_2(%arg0: i32, %arg1: i32, %arg2: i32) -> (i32, i32, i32, i32) {
    %c1_i32 = arith.constant 1 : i32
    %0 = arith.addi %arg2, %c1_i32 : i32
    %c16_i32 = arith.constant 16 : i32
    %1 = arith.muli %0, %c16_i32 : i32
    %c1_i32_0 = arith.constant 1 : i32
    %2 = arith.addi %1, %c1_i32_0 : i32
    %c0_i32 = arith.constant 0 : i32
    %c0_i32_1 = arith.constant 0 : i32
    %c0_i32_2 = arith.constant 0 : i32
    return %arg0, %2, %c0_i32, %c0_i32_1 : i32, i32, i32, i32
  }
  func.func @transform_3(%arg0: i32, %arg1: i32, %arg2: i32) -> (i32, i32, i32, i32) {
    %c0_i32 = arith.constant 0 : i32
    %c0_i32_0 = arith.constant 0 : i32
    %c0_i32_1 = arith.constant 0 : i32
    %c0_i32_2 = arith.constant 0 : i32
    return %c0_i32, %c0_i32_0, %c0_i32_1, %arg1 : i32, i32, i32, i32
  }
  func.func @transform_4(%arg0: i32, %arg1: i32, %arg2: i32) -> (i32, i32) {
    %c0_i32 = arith.constant 0 : i32
    %c0_i32_0 = arith.constant 0 : i32
    return %c0_i32, %arg1 : i32, i32
  }
  func.func @transform_5(%arg0: i32, %arg1: i32, %arg2: i32) -> (i32, i32) {
    %c0_i32 = arith.constant 0 : i32
    %c0_i32_0 = arith.constant 0 : i32
    return %c0_i32, %arg1 : i32, i32
  }
  func.func @transform_6(%arg0: i32, %arg1: i32, %arg2: i32) -> (i32, i32, i32, i32) {
    %c0_i32 = arith.constant 0 : i32
    %c0_i32_0 = arith.constant 0 : i32
    return %arg0, %arg2, %c0_i32, %arg1 : i32, i32, i32, i32
  }
}

</mosaic_0001>

<bundles_post_ra>
// kernel: conv_block_forward.1
= control target key start
LH: loop header
LB: loop body
LE: loop exit
PB: predicated region body
PF: predicated region fallthrough
CT: control target
= control target key end

     0   :  { %s4857_s21 = smov 0   ;;  %s4859_s22 = smov 0   ;;  %s5990_s0 = inlined_call_operand.vmem [shape: bf16[2,18,18,16], index: 0, kind: input, shape index: {}, may-alias: {0,1,2}]   ;;  %s5991_s1 = inlined_call_operand.vmem [shape: bf16[2,18,18,16], index: 1, kind: input, shape index: {}, may-alias: {0,1,2}]   ;;  %s5992_s2 = inlined_call_operand.vmem [shape: bf16[2,18,18,16], index: 2, kind: input, shape index: {}, may-alias: {0,1,2}]   ;;  %s5993_s3 = inlined_call_operand.vmem [shape: bf16[3,3,16,64], index: 3, kind: input, shape index: {}]   ;;  %s5994_s4 = inlined_call_operand.vmem [shape: f32[1,64], index: 4, kind: input, shape index: {}]   ;;  %s5995_s5 = inlined_call_operand.vmem [shape: f32[1,64], index: 5, kind: input, shape index: {}]   ;;  %s5996_s6 = inlined_call_operand.vmem [shape: bf16[2,16,16,64], index: 6, kind: output, shape index: {}]  }
   0x1   :  { %s4861_s23 = smov 0  }
   0x2 LB: > { %s35_s24 = sadd.s32 1, %s4816_s22  ;;  %p3703_p0 = scmp.ge.s32.totalorder %s4820_s23, 1  ;;  %s4820_s23 = sphi %s4861_s23, %s16_s23   ;;  %s4816_s22 = sphi %s4859_s22, %s6072_s22   ;;  %s4812_s21 = sphi %s4857_s21, %s6071_s21  }
   0x3   : > { %p37_p1 = scmp.ge.s32.totalorder %s35_s24, 2  ;;  %p330_p2 = scmp.lt.s32.totalorder %s4820_s23, 3 }
   0x5   : > { %s6074_s24 = smov (%p37_p1, %s35_s24), 0  ;;  %p331_p3 = pnand %p3703_p0, %p330_p2 }
   0x7   : > { %334 = sbr.rel (%p331_p3) target bundleno = 558 (0x22e), region = 44 }
   0xe   : > { %v4767_v0 = vld [vmem:[%s5993_s3 + $0x8] sm:$0xff]   ;;  %p417_p4 = scmp.lt.s32.totalorder %s4812_s21, 1  ;;  %v4768_v1 = vld [vmem:[%s5993_s3 + $0x20] sm:$0xff]   ;;  %vm541_vm0 = vsmask.f32 3328  ;;  %vm985_vm2 = vcmask 130048  }
   0xf   : > { %4176 = vmatprep.subr.bf16.mxu1 %v4767_v0  ;;  %v4886_v2 = vld [vmem:[%s5993_s3] sm:$0xff]   ;;  %4312 = vmatprep.subr.bf16.mxu0 %v4768_v1  ;;  %v4895_v3 = vld [vmem:[%s5993_s3 + $0x28] sm:$0xff]   ;;  %vm542_vm1 = vsmask.f32 7440  ;;  %vm1506_vm4 = vcmask 1042432   ;;  %vm1507_vm5 = vcmask 1046532  }
  0x10   : > { %s6076_s21 = smov (!%p417_p4, %s4812_s21), 1  ;;  %4177 = vmatpush3.bf16.msra.mxu1 %v4767_v0  ;;  %4313 = vmatpush3.bf16.msra.mxu0 %v4768_v1  ;;  %vm4934_vm3 = vmor %vm541_vm0, %vm542_vm1  ;;  %vm3473_vm7 = vcmask 519168  }
  0x11   : > { %s4889_s7 = smul.u32 216, %s6076_s21  ;;  %4210 = vmatprep.subr.bf16.mxu1 %v4886_v2  ;;  %4346 = vmatprep.subr.bf16.mxu0 %v4895_v3  ;;  %vm5118_vm6 = vmor %vm1506_vm4, %vm1507_vm5  ;;  %s3990_s17 = sshll.u32 %s6076_s21, 7 }
  0x12   : > { %s5851_s20 = scalar_lea.vmem %s5996_s6, %s3990_s17 }
  0x13   : > { %s4901_s12 = scalar_lea.vmem %s5990_s0, %s4889_s7  ;;  %s3987_s25 = sadd.s32 192, %s4889_s7 }
  0x14   : > { %v4905_v4 = vld [vmem:[%s4901_s12] sm:$0xf]  ;;  %v4908_v5 = vld [vmem:[%s4901_s12 + $0x4] sm:$0xf]  ;;  %v487_v6 = vld [vmem:[%s4901_s12 + $0x8] sm:$0x1]  ;;  %s442_s28 = scalar_lea.vmem %s5991_s1, %s3987_s25 }
  0x15   : > { %v545_v7 = vshrl.u32 %v4905_v4, 16  ;;  %v548_v8 = vshll.u32 %v4905_v4, 16  ;;  %v554_v9 = vshll.u32 %v4908_v5, 16  ;;  %v558_v10 = vshrl.u32 %v4908_v5, 16  ;;  %v4916_v11 = vld [vmem:[%s4901_s12 + $0xc] sm:$0xf] }
  0x16   : > { %v564_v12 = vshll.u32 %v487_v6, 16  ;;  %v4919_v13 = vld [vmem:[%s4901_s12 + $0x10] sm:$0xf]  ;;  %v4922_v14 = vld [vmem:[%s4901_s12 + $0x14] sm:$0x1]  ;;  %v569_v20 = vshrl.u32 %v4916_v11, 16 }
  0x17   : > { %v547_v15 = vrot.slane %v545_v7, 4  ;;  %v550_v16 = vrot.slane %v548_v8, 5  ;;  %v556_v17 = vrot.slane %v554_v9, 5  ;;  %v560_v18 = vrot.slane %v558_v10, 4  ;;  %v4930_v27 = vld [vmem:[%s4901_s12 + $0x18] sm:$0xf] }
  0x18   : > { %v566_v19 = vrot.slane %v564_v12, 5  ;;  %v572_v21 = vshll.u32 %v4916_v11, 16  ;;  %v578_v22 = vshll.u32 %v4919_v13, 16  ;;  %v582_v25 = vshrl.u32 %v4919_v13, 16  ;;  %v4943_v33 = vld [vmem:[%s4901_s12 + $0x1c] sm:$0xf] }
  0x19   : > { %v551_v23 = vor.u32 %v550_v16, %v547_v15  ;;  %v561_v24 = vor.u32 %v560_v18, %v556_v17  ;;  %v588_v26 = vshll.u32 %v4922_v14, 16  ;;  %v571_v29 = vrot.slane %v569_v20, 4  ;;  %v4947_v40 = vld [vmem:[%s4901_s12 + $0x20] sm:$0x1]  ;;  %v4957_v51 = vld [vmem:[%s4901_s12 + $0x24] sm:$0xf] }
  0x1a   : > { %v574_v30 = vrot.slane %v572_v21, 5  ;;  %v580_v31 = vrot.slane %v578_v22, 5  ;;  %v4940_v32 = vcombine.low %v4916_v11, %v4919_v13  ;;  %v584_v36 = vrot.slane %v582_v25, 4  ;;  %v4962_v56 = vld [vmem:[%s4901_s12 + $0x28] sm:$0xf]  ;;  %v4983_v12 = vld [vmem:[%s5993_s3 + $0x10] sm:$0xff]  }
  0x1b   : > { %v552_v34 = vrot.slane %v551_v23, 4  ;;  %v562_v35 = vrot.slane %v561_v24, 4  ;;  %v590_v37 = vrot.slane %v588_v26, 5  ;;  %v1521_v39 = vrot.slane %v4922_v14, 5  ;;  %v4970_v61 = vld [vmem:[%s4901_s12 + $0x2c] sm:$0x1] }
  0x1c   : > { %v575_v38 = vor.u32 %v574_v30, %v571_v29  ;;  %v593_v41 = vshrl.u32 %v4930_v27, 16  ;;  %v596_v42 = vshll.u32 %v4930_v27, 16  ;;  %v585_v45 = vor.u32 %v584_v36, %v580_v31  ;;  %v4976_v6 = vld [vmem:[%s4901_s12 + $0x30] sm:$0xf]  ;;  %v4995_v23 = vld [vmem:[%s4901_s12 + $0x38] sm:$0x1] }
  0x1d   : > { %v557_v43 = vsel %vm4934_vm3, %v552_v34, %v556_v17  ;;  %v567_v44 = vsel %vm4934_vm3, %v562_v35, %v566_v19  ;;  %v602_v46 = vshll.u32 %v4943_v33, 16  ;;  %v606_v54 = vshrl.u32 %v4943_v33, 16  ;;  %v4988_v19 = vld [vmem:[%s4901_s12 + $0x34] sm:$0xf]  ;;  %s3989_s10 = sadd.s32 204, %s4889_s7 }
  0x1e   : > { %v3711_v47 = vcombine.low %v557_v43, %v567_v44  ;;  %v576_v48 = vrot.slane %v575_v38, 4  ;;  %v595_v49 = vrot.slane %v593_v41, 4  ;;  %v598_v50 = vrot.slane %v596_v42, 5  ;;  %v5010_v43 = vld [vmem:[%s4901_s12 + $0x40] sm:$0xf]  ;;  %s5654_s13 = scalar_lea.vmem %s5992_s2, %s3989_s10 }
  0x1f   : > { %v586_v52 = vrot.slane %v585_v45, 4  ;;  %v604_v53 = vrot.slane %v602_v46, 5  ;;  %v612_v55 = vshll.u32 %v4947_v40, 16  ;;  %v1525_v59 = vrot.slane %v4943_v33, 5 }
  0x20   : > { %4178 = vmatprep.mubr.msk.bf16.mxu1 %vm985_vm2, %v3711_v47  ;;  %v581_v57 = vsel %vm4934_vm3, %v576_v48, %v580_v31  ;;  %v599_v58 = vor.u32 %v598_v50, %v595_v49  ;;  %v1528_v60 = vrot.slane %v4947_v40, 5  ;;  %v608_v63 = vrot.slane %v606_v54, 4  ;;  %v5017_v48 = vld [vmem:[%s5993_s3 + $0x30] sm:$0xff]  }
  0x21   : > { %v591_v62 = vsel %vm4934_vm3, %v586_v52, %v590_v37  ;;  %v614_v0 = vrot.slane %v612_v55, 5  ;;  %v617_v1 = vshrl.u32 %v4957_v51, 16  ;;  %v620_v9 = vshll.u32 %v4957_v51, 16  ;;  %v5003_v37 = vld [vmem:[%s4901_s12 + $0x3c] sm:$0xf] }
  0x22   : > { %v3712_v7 = vcombine.low %v581_v57, %v591_v62  ;;  %v600_v8 = vrot.slane %v599_v58, 4  ;;  %v626_v10 = vshll.u32 %v4962_v56, 16  ;;  %v609_v15 = vor.u32 %v608_v63, %v604_v53  ;;  %v5027_v57 = vld [vmem:[%s4901_s12 + $0x44] sm:$0x1]  ;;  %v5032_v63 = vld [vmem:[%s4901_s12 + $0x48] sm:$0xf] }
  0x23   : > { %v619_v16 = vrot.slane %v617_v1, 4  ;;  %v630_v17 = vshrl.u32 %v4962_v56, 16  ;;  %v636_v18 = vshll.u32 %v4970_v61, 16  ;;  %v622_v21 = vrot.slane %v620_v9, 5  ;;  %v5039_v9 = vld [vmem:[%s4901_s12 + $0x4c] sm:$0xf] }
  0x24   : > { %4314 = vmatprep.mubr.msk.bf16.mxu0 %vm985_vm2, %v3712_v7  ;;  %4179 = vmatmul.mubr.msk.bf16.vlgmr.msra.gmra.mrb[0].mxu1 %vm985_vm2, %v3712_v7  ;;  %v605_v20 = vsel %vm4934_vm3, %v600_v8, %v604_v53  ;;  %v628_v22 = vrot.slane %v626_v10, 5  ;;  %v641_v24 = vshrl.u32 %v4976_v6, 16  ;;  %v610_v25 = vrot.slane %v609_v15, 4 }
  0x25   : > { %4211 = vmatpush3.bf16.msra.mxu1 %v4886_v2  ;;  %v632_v26 = vrot.slane %v630_v17, 4  ;;  %v638_v29 = vrot.slane %v636_v18, 5  ;;  %v644_v30 = vshll.u32 %v4976_v6, 16  ;;  %v623_v31 = vor.u32 %v622_v21, %v619_v16 }
  0x26   : > { %v643_v34 = vrot.slane %v641_v24, 4  ;;  %v650_v35 = vshll.u32 %v4988_v19, 16  ;;  %v654_v36 = vshrl.u32 %v4988_v19, 16  ;;  %4244 = vmatprep.subr.bf16.mxu1 %v4983_v12  ;;  %v615_v38 = vsel %vm4934_vm3, %v610_v25, %v614_v0  ;;  %v5055_v25 = vld [vmem:[%s4901_s12 + $0x50] sm:$0x1] }
  0x27   : > { %v633_v41 = vor.u32 %v632_v26, %v628_v22  ;;  %v646_v2 = vrot.slane %v644_v30, 5  ;;  %v660_v42 = vshll.u32 %v4995_v23, 16  ;;  %v5012_v44 = vcombine.low %v605_v20, %v615_v38  ;;  %v5060_v30 = vld [vmem:[%s4901_s12 + $0x54] sm:$0xf]  ;;  %v5065_v38 = vld [vmem:[%s4901_s12 + $0x58] sm:$0xf] }
  0x28   : > { %v624_v45 = vrot.slane %v623_v31, 4  ;;  %v652_v46 = vrot.slane %v650_v35, 5  ;;  %v656_v47 = vrot.slane %v654_v36, 4  ;;  %v665_v53 = vshrl.u32 %v5003_v37, 16  ;;  %6031 = vst [vmem:[#allocation4_spill] sm:$0xff] %v5060_v30 }
  0x29   : > { %6029 = vst [vmem:[#allocation2_spill] sm:$0xff] %v5012_v44  ;;  %v634_v49 = vrot.slane %v633_v41, 4  ;;  %v647_v50 = vor.u32 %v646_v2, %v643_v34  ;;  %v662_v52 = vrot.slane %v660_v42, 5  ;;  %4315 = vmatmul.mubr.msk.bf16.vlgmr.msra.gmra.mrb[0].mxu0 %vm985_vm2, %v5012_v44  ;;  %4182 = vmatprep.mubr.msk.bf16.mxu1 %vm985_vm2, %v5012_v44  ;;  %v668_v58 = vshll.u32 %v5003_v37, 16 }
  0x2a   : > { %v629_v54 = vsel %vm4934_vm3, %v624_v45, %v628_v22  ;;  %v657_v55 = vor.u32 %v656_v47, %v652_v46  ;;  %v674_v62 = vshll.u32 %v5010_v43, 16  ;;  %4347 = vmatpush3.bf16.msra.mxu0 %v4895_v3  ;;  %v667_v7 = vrot.slane %v665_v53, 4 }
  0x2b   : > { %v639_v0 = vsel %vm4934_vm3, %v634_v49, %v638_v29  ;;  %v648_v1 = vrot.slane %v647_v50, 4  ;;  %v678_v8 = vshrl.u32 %v5010_v43, 16  ;;  %v670_v16 = vrot.slane %v668_v58, 5  ;;  %4380 = vmatprep.subr.bf16.mxu0 %v5017_v48 }
  0x2c   : > { %v5041_v10 = vcombine.low %v629_v54, %v639_v0  ;;  %v658_v15 = vrot.slane %v657_v55, 4  ;;  %v676_v17 = vrot.slane %v674_v62, 5  ;;  %v684_v20 = vshll.u32 %v5027_v57, 16  ;;  %v5078_v55 = vld [vmem:[%s4901_s12 + $0x5c] sm:$0x1] }
  0x2d   : > { %v653_v3 = vsel %vm4934_vm3, %v648_v1, %v652_v46  ;;  %v680_v18 = vrot.slane %v678_v8, 4  ;;  %v689_v21 = vshrl.u32 %v5032_v63, 16  ;;  %v671_v24 = vor.u32 %v670_v16, %v667_v7  ;;  %v5082_v62 = vld [vmem:[%s4901_s12 + $0x60] sm:$0xf] }
  0x2e   : > { %6030 = vst [vmem:[#allocation3_spill] sm:$0xff] %v5041_v10  ;;  %4318 = vmatprep.mubr.msk.bf16.mxu0 %vm985_vm2, %v5041_v10  ;;  %4183 = vmatmul.mubr.msk.bf16.gmra.mrb[4].mxu1 %vm985_vm2, %v5041_v10  ;;  %v663_v22 = vsel %vm4934_vm3, %v658_v15, %v662_v52  ;;  %v692_v26 = vshll.u32 %v5032_v63, 16  ;;  %v698_v29 = vshll.u32 %v5039_v9, 16  ;;  %v686_v35 = vrot.slane %v684_v20, 5  ;;  %v5087_v15 = vld [vmem:[%s4901_s12 + $0x64] sm:$0xf] }
  0x2f   : > { %v5062_v31 = vcombine.low %v653_v3, %v663_v22  ;;  %v681_v34 = vor.u32 %v680_v18, %v676_v17  ;;  %v691_v36 = vrot.slane %v689_v21, 4  ;;  %v672_v41 = vrot.slane %v671_v24, 4  ;;  %v5298_v10 = vld [vmem:[%s4901_s12 + $0xa8] sm:$0xf] }
  0x30   : > { %v694_v2 = vrot.slane %v692_v26, 5  ;;  %v700_v42 = vrot.slane %v698_v29, 5  ;;  %v702_v45 = vshrl.u32 %v5039_v9, 16  ;;  %v708_v47 = vshll.u32 %v5055_v25, 16 }
  0x31   : > { %6032 = vst [vmem:[#allocation5_spill] sm:$0xff] %v5062_v31  ;;  %4186 = vmatprep.mubr.msk.bf16.mxu1 %vm985_vm2, %v5062_v31  ;;  %v682_v46 = vrot.slane %v681_v34, 4  ;;  %v713_v49 = vshrl.u32 %v5060_v30, 16  ;;  %v716_v50 = vshll.u32 %v5060_v30, 16  ;;  %4319 = vmatmul.mubr.msk.bf16.gmra.mrb[4].mxu0 %vm985_vm2, %v5062_v31  ;;  %v677_v52 = vsel %vm4934_vm3, %v672_v41, %v676_v17  ;;  %v5101_v34 = vld [vmem:[%s4901_s12 + $0x68] sm:$0x1] }
  0x32   : > { %v695_v53 = vor.u32 %v694_v2, %v691_v36  ;;  %v704_v54 = vrot.slane %v702_v45, 4  ;;  %v722_v58 = vshll.u32 %v5065_v38, 16  ;;  %v710_v1 = vrot.slane %v708_v47, 5 }
  0x33   : > { %v687_v0 = vsel %vm4934_vm3, %v682_v46, %v686_v35  ;;  %v715_v7 = vrot.slane %v713_v49, 4  ;;  %v718_v8 = vrot.slane %v716_v50, 5  ;;  %v726_v21 = vshrl.u32 %v5065_v38, 16 }
  0x34   : > { %v5089_v16 = vcombine.low %v677_v52, %v687_v0  ;;  %v696_v17 = vrot.slane %v695_v53, 4  ;;  %v705_v3 = vor.u32 %v704_v54, %v700_v42  ;;  %v724_v18 = vrot.slane %v722_v58, 5 }
  0x35   : > { %v719_v20 = vor.u32 %v718_v8, %v715_v7  ;;  %v732_v22 = vshll.u32 %v5078_v55, 16  ;;  %v737_v24 = vshrl.u32 %v5082_v62, 16  ;;  %v740_v35 = vshll.u32 %v5082_v62, 16 }
  0x36   : > { %6033 = vst [vmem:[#allocation6_spill] sm:$0xff] %v5089_v16  ;;  %4322 = vmatprep.mubr.msk.bf16.mxu0 %vm985_vm2, %v5089_v16  ;;  %4187 = vmatmul.mubr.msk.bf16.gmra.mrb[8].mxu1 %vm985_vm2, %v5089_v16  ;;  %v701_v26 = vsel %vm4934_vm3, %v696_v17, %v700_v42  ;;  %v706_v29 = vrot.slane %v705_v3, 4  ;;  %v746_v36 = vshll.u32 %v5087_v15, 16  ;;  %v728_v2 = vrot.slane %v726_v21, 4  ;;  %v5109_v42 = vld [vmem:[%s4901_s12 + $0x6c] sm:$0xf] }
  0x37   : > { %v720_v41 = vrot.slane %v719_v20, 4  ;;  %v734_v45 = vrot.slane %v732_v22, 5  ;;  %v739_v46 = vrot.slane %v737_v24, 4  ;;  %v742_v49 = vrot.slane %v740_v35, 5  ;;  %v5132_v22 = vld [vmem:[%s4901_s12 + $0x74] sm:$0x1] }
  0x38   : > { %v711_v47 = vsel %vm4934_vm3, %v706_v29, %v710_v1  ;;  %v748_v50 = vrot.slane %v746_v36, 5  ;;  %v750_v52 = vshrl.u32 %v5087_v15, 16  ;;  %v729_v58 = vor.u32 %v728_v2, %v724_v18  ;;  %v5123_v1 = vld [vmem:[%s4901_s12 + $0x70] sm:$0xf]  ;;  %v5275_v16 = vld [vmem:[%s4901_s12 + $0xa0] sm:$0xf] }
  0x39   : > { %v5111_v53 = vcombine.low %v701_v26, %v711_v47  ;;  %v725_v54 = vsel %vm4934_vm3, %v720_v41, %v724_v18  ;;  %v756_v0 = vshll.u32 %v5101_v34, 16  ;;  %v743_v8 = vor.u32 %v742_v49, %v739_v46 }
  0x3a   : > { %v752_v17 = vrot.slane %v750_v52, 4  ;;  %v3778_v3 = vrot.slane %v4916_v11, 9  ;;  %v1518_v20 = vrot.slane %v4919_v13, 5  ;;  %v730_v18 = vrot.slane %v729_v58, 4 }
  0x3b   : > { %6034 = vst [vmem:[#allocation7_spill] sm:$0xff] %v5111_v53  ;;  %4323 = vmatmul.mubr.msk.bf16.gmra.mrb[8].mxu0 %vm985_vm2, %v5111_v53  ;;  %4190 = vmatprep.mubr.msk.bf16.mxu1 %vm985_vm2, %v5111_v53  ;;  %v758_v21 = vrot.slane %v756_v0, 5  ;;  %v761_v24 = vshrl.u32 %v5109_v42, 16  ;;  %v764_v26 = vshll.u32 %v5109_v42, 16  ;;  %v744_v29 = vrot.slane %v743_v8, 4 }
  0x3c   : > { %v753_v35 = vor.u32 %v752_v17, %v748_v50  ;;  %v1519_v11 = vsel %vm5118_vm6, %v3778_v3, %v1518_v20  ;;  %v1520_v13 = vrot.slane %v1518_v20, 4  ;;  %v735_v36 = vsel %vm4934_vm3, %v730_v18, %v734_v45  ;;  %v5150_v0 = vld [vmem:[%s4901_s12 + $0x78] sm:$0xf]  ;;  %v5166_v20 = vld [vmem:[%s4901_s12 + $0x7c] sm:$0xf] }
  0x3d   : > { %v763_v41 = vrot.slane %v761_v24, 4  ;;  %v766_v2 = vrot.slane %v764_v26, 5  ;;  %v770_v46 = vshll.u32 %v5123_v1, 16  ;;  %v5141_v47 = vcombine.low %v725_v54, %v735_v36 }
  0x3e   : > { %v749_v49 = vsel %vm4934_vm3, %v744_v29, %v748_v50  ;;  %v754_v52 = vrot.slane %v753_v35, 4  ;;  %v1522_v58 = vsel %vm5118_vm6, %v1520_v13, %v1521_v39  ;;  %v774_v3 = vshrl.u32 %v5123_v1, 16  ;;  %v5171_v29 = vld [vmem:[%s4901_s12 + $0x80] sm:$0x1] }
  0x3f   : > { %6037 = vst [vmem:[#allocation8_spill] sm:$0xff] %v5141_v47  ;;  %v5152_v45 = vcombine.low %v1519_v11, %v1522_v58  ;;  %v767_v8 = vor.u32 %v766_v2, %v763_v41  ;;  %v772_v17 = vrot.slane %v770_v46, 5  ;;  %4326 = vmatprep.mubr.msk.bf16.mxu0 %vm985_vm2, %v5141_v47  ;;  %4191 = vmatmul.mubr.msk.bf16.gmra.mrb[12].mxu1 %vm985_vm2, %v5141_v47  ;;  %v780_v39 = vshll.u32 %v5132_v22, 16  ;;  %v5197_v58 = vld [vmem:[%s4901_s12 + $0x84] sm:$0xf] }
  0x40   : > { %v759_v14 = vsel %vm4934_vm3, %v754_v52, %v758_v21  ;;  %v3779_v50 = vrot.slane %v4930_v27, 9  ;;  %v1527_v54 = vrot.slane %v1525_v59, 4  ;;  %v776_v26 = vrot.slane %v774_v3, 4  ;;  %v5268_v47 = vld [vmem:[%s4901_s12 + $0x9c] sm:$0xf] }
  0x41   : > { %6038 = vst [vmem:[#allocation9_spill] sm:$0xff] %v5152_v45  ;;  %v5168_v18 = vcombine.low %v749_v49, %v759_v14  ;;  %v768_v24 = vrot.slane %v767_v8, 4  ;;  %v785_v35 = vshrl.u32 %v5150_v0, 16  ;;  %v782_v11 = vrot.slane %v780_v39, 5 }
  0x42   : > { %v1526_v21 = vsel %vm5118_vm6, %v3779_v50, %v1525_v59  ;;  %v1529_v13 = vsel %vm5118_vm6, %v1527_v54, %v1528_v60  ;;  %v788_v36 = vshll.u32 %v5150_v0, 16  ;;  %v777_v2 = vor.u32 %v776_v26, %v772_v17  ;;  %v5203_v26 = vld [vmem:[%s4901_s12 + $0x88] sm:$0xf] }
  0x43   : > { %6039 = vst [vmem:[#allocation10_spill] sm:$0xff] %v5168_v18  ;;  %4327 = vmatmul.mubr.msk.bf16.gmra.mrb[12].mxu0 %vm985_vm2, %v5168_v18  ;;  %4194 = vmatprep.mubr.msk.bf16.mxu1 %vm985_vm2, %v5168_v18  ;;  %v773_v41 = vsel %vm4934_vm3, %v768_v24, %v772_v17  ;;  %v5189_v46 = vcombine.low %v1526_v21, %v1529_v13  ;;  %v787_v59 = vrot.slane %v785_v35, 4  ;;  %v794_v60 = vshll.u32 %v5166_v20, 16 }
  0x44   : > { %4348 = vmatprep.mubr.msk.bf16.mxu0 %vm985_vm2, %v5152_v45  ;;  %v790_v40 = vrot.slane %v788_v36, 5  ;;  %v798_v49 = vshrl.u32 %v5166_v20, 16  ;;  %v804_v52 = vshll.u32 %v5171_v29, 16  ;;  %v778_v8 = vrot.slane %v777_v2, 4 }
  0x45   : > { %6040 = vst [vmem:[#allocation11_spill] sm:$0xff] %v5189_v46  ;;  %v3780_v17 = vrot.slane %v4957_v51, 9  ;;  %v1532_v3 = vrot.slane %v4962_v56, 5  ;;  %v1535_v14 = vrot.slane %v4970_v61, 5  ;;  %v796_v50 = vrot.slane %v794_v60, 5 }
  0x46   : > { %v791_v39 = vor.u32 %v790_v40, %v787_v59  ;;  %v800_v54 = vrot.slane %v798_v49, 4  ;;  %v806_v24 = vrot.slane %v804_v52, 5  ;;  %v783_v35 = vsel %vm4934_vm3, %v778_v8, %v782_v11  ;;  %v5213_v59 = vld [vmem:[%s4901_s12 + $0x8c] sm:$0x1]  ;;  %v5223_v8 = vld [vmem:[%s5993_s3 + $0x38] sm:$0xff]  }
  0x47   : > { %v1533_v21 = vsel %vm5118_vm6, %v3780_v17, %v1532_v3  ;;  %v1534_v13 = vrot.slane %v1532_v3, 4  ;;  %v809_v36 = vshrl.u32 %v5197_v58, 16  ;;  %v5210_v2 = vcombine.low %v773_v41, %v783_v35  ;;  %6042 = vst [vmem:[#allocation13_spill] sm:$0xff] %v5223_v8 }
  0x48   : > { %v792_v18 = vrot.slane %v791_v39, 4  ;;  %v801_v61 = vor.u32 %v800_v54, %v796_v50  ;;  %v812_v40 = vshll.u32 %v5197_v58, 16  ;;  %v818_v11 = vshll.u32 %v5203_v26, 16  ;;  %v5232_v39 = vld [vmem:[%s4901_s12 + $0x90] sm:$0xf] }
  0x49   : > { %6041 = vst [vmem:[#allocation12_spill] sm:$0xff] %v5210_v2  ;;  %v1536_v60 = vsel %vm5118_vm6, %v1534_v13, %v1535_v14  ;;  %v811_v49 = vrot.slane %v809_v36, 4  ;;  %v822_v52 = vshrl.u32 %v5203_v26, 16  ;;  %4195 = vmatmul.mubr.msk.bf16.gmra.mrb[16].mxu1 %vm985_vm2, %v5210_v2  ;;  %v828_v13 = vshll.u32 %v5213_v59, 16  ;;  %v5251_v2 = vld [vmem:[%s4901_s12 + $0x98] sm:$0x1] }
  0x4a   : > { %v797_v41 = vsel %vm4934_vm3, %v792_v18, %v796_v50  ;;  %v802_v17 = vrot.slane %v801_v61, 4  ;;  %v5229_v3 = vcombine.low %v1533_v21, %v1536_v60  ;;  %v814_v14 = vrot.slane %v812_v40, 5  ;;  %v5246_v40 = vld [vmem:[%s4901_s12 + $0x94] sm:$0xf] }
  0x4b   : > { %4349 = vmatmul.mubr.msk.bf16.vlgmr.msra.gmra.mrb[0].mxu0 %vm985_vm2, %v5189_v46  ;;  %v820_v54 = vrot.slane %v818_v11, 5  ;;  %v824_v35 = vrot.slane %v822_v52, 4  ;;  %v3781_v36 = vrot.slane %v4976_v6, 9  ;;  %v1539_v21 = vrot.slane %v4988_v19, 5 }
  0x4c   : > { %6043 = vst [vmem:[#allocation14_spill] sm:$0xff] %v5229_v3  ;;  %4381 = vmatpush3.bf16.msra.mxu0 %v5017_v48  ;;  %v807_v18 = vsel %vm4934_vm3, %v802_v17, %v806_v24  ;;  %4352 = vmatprep.mubr.msk.bf16.mxu0 %vm985_vm2, %v5229_v3  ;;  %v815_v50 = vor.u32 %v814_v14, %v811_v49  ;;  %v1542_v61 = vrot.slane %v4995_v23, 5  ;;  %v830_v52 = vrot.slane %v828_v13, 5 }
  0x4d   : > { %v5248_v60 = vcombine.low %v797_v41, %v807_v18  ;;  %v825_v11 = vor.u32 %v824_v35, %v820_v54  ;;  %v833_v48 = vshrl.u32 %v5232_v39, 16  ;;  %4414 = vmatprep.subr.bf16.mxu0 %v5223_v8  ;;  %v1540_v49 = vsel %vm5118_vm6, %v3781_v36, %v1539_v21 }
  0x4e   : > { %v816_v24 = vrot.slane %v815_v50, 4  ;;  %v1541_v17 = vrot.slane %v1539_v21, 4  ;;  %v836_v23 = vshll.u32 %v5232_v39, 16  ;;  %v842_v35 = vshll.u32 %v5246_v40, 16 }
  0x4f   : > { %6044 = vst [vmem:[#allocation15_spill] sm:$0xff] %v5248_v60  ;;  %4198 = vmatprep.mubr.msk.bf16.mxu1 %vm985_vm2, %v5248_v60  ;;  %v826_v41 = vrot.slane %v825_v11, 4  ;;  %v835_v14 = vrot.slane %v833_v48, 4  ;;  %v846_v13 = vshrl.u32 %v5246_v40, 16  ;;  %v852_v21 = vshll.u32 %v5251_v2, 16 }
  0x50   : > { %v821_v18 = vsel %vm4934_vm3, %v816_v24, %v820_v54  ;;  %v1543_v50 = vsel %vm5118_vm6, %v1541_v17, %v1542_v61  ;;  %v838_v36 = vrot.slane %v836_v23, 5  ;;  %v844_v48 = vrot.slane %v842_v35, 5 }
  0x51   : > { %v831_v60 = vsel %vm4934_vm3, %v826_v41, %v830_v52  ;;  %v5272_v11 = vcombine.low %v1540_v49, %v1543_v50  ;;  %v848_v53 = vrot.slane %v846_v13, 4  ;;  %v854_v24 = vrot.slane %v852_v21, 5  ;;  %v5288_v41 = vld [vmem:[%s4901_s12 + $0xa4] sm:$0x1] }
  0x52   : > { %v5277_v31 = vcombine.low %v821_v18, %v831_v60  ;;  %v839_v54 = vor.u32 %v838_v36, %v835_v14  ;;  %v3782_v61 = vrot.slane %v5003_v37, 9  ;;  %v1546_v23 = vrot.slane %v5010_v43, 5 }
  0x53   : > { %6045 = vst [vmem:[#allocation16_spill] sm:$0xff] %v5272_v11  ;;  %4353 = vmatmul.mubr.msk.bf16.gmra.mrb[4].mxu0 %vm985_vm2, %v5272_v11  ;;  %v849_v17 = vor.u32 %v848_v53, %v844_v48  ;;  %v1549_v52 = vrot.slane %v5027_v57, 5  ;;  %v857_v49 = vshrl.u32 %v5268_v47, 16  ;;  %v860_v14 = vshll.u32 %v5268_v47, 16 }
  0x54   : > { %6046 = vst [vmem:[#allocation17_spill] sm:$0xff] %v5277_v31  ;;  %4199 = vmatmul.mubr.msk.bf16.gmra.mrb[20].mxu1 %vm985_vm2, %v5277_v31  ;;  %v840_v60 = vrot.slane %v839_v54, 4  ;;  %v866_v35 = vshll.u32 %v5275_v16, 16  ;;  %v870_v53 = vshrl.u32 %v5275_v16, 16  ;;  %v1547_v57 = vsel %vm5118_vm6, %v3782_v61, %v1546_v23 }
  0x55   : > { %v850_v13 = vrot.slane %v849_v17, 4  ;;  %v1548_v18 = vrot.slane %v1546_v23, 4  ;;  %v859_v50 = vrot.slane %v857_v49, 4  ;;  %v862_v21 = vrot.slane %v860_v14, 5  ;;  %v5307_v23 = vld [vmem:[%s4901_s12 + $0xac] sm:$0xf] }
  0x56   : > { %v845_v36 = vsel %vm4934_vm3, %v840_v60, %v844_v48  ;;  %v868_v54 = vrot.slane %v866_v35, 5  ;;  %v872_v31 = vrot.slane %v870_v53, 4  ;;  %v876_v17 = vshll.u32 %v5288_v41, 16 }
  0x57   : > { %v855_v44 = vsel %vm4934_vm3, %v850_v13, %v854_v24  ;;  %v1550_v11 = vsel %vm5118_vm6, %v1548_v18, %v1549_v52  ;;  %v3783_v61 = vrot.slane %v5032_v63, 9  ;;  %v863_v60 = vor.u32 %v862_v21, %v859_v50 }
  0x58   : > { %v5309_v49 = vcombine.low %v845_v36, %v855_v44  ;;  %v5311_v48 = vcombine.low %v1547_v57, %v1550_v11  ;;  %v873_v14 = vor.u32 %v872_v31, %v868_v54  ;;  %v878_v35 = vrot.slane %v876_v17, 5  ;;  %v5321_v11 = vld [vmem:[%s4901_s12 + $0xb0] sm:$0x1] }
  0x59   : > { %v1553_v53 = vrot.slane %v5039_v9, 5  ;;  %v1556_v24 = vrot.slane %v5055_v25, 5  ;;  %v881_v52 = vshrl.u32 %v5298_v10, 16  ;;  %v864_v44 = vrot.slane %v863_v60, 4 }
  0x5a   : > { %6047 = vst [vmem:[#allocation18_spill] sm:$0xff] %v5309_v49  ;;  %6048 = vst [vmem:[#allocation19_spill] sm:$0xff] %v5311_v48  ;;  %4202 = vmatprep.mubr.msk.bf16.mxu1 %vm985_vm2, %v5309_v49  ;;  %4356 = vmatprep.mubr.msk.bf16.mxu0 %vm985_vm2, %v5311_v48  ;;  %v874_v13 = vrot.slane %v873_v14, 4  ;;  %v884_v31 = vshll.u32 %v5298_v10, 16  ;;  %v890_v57 = vshll.u32 %v5307_v23, 16  ;;  %v894_v36 = vshrl.u32 %v5307_v23, 16 }
  0x5b   : > { %v1554_v25 = vsel %vm5118_vm6, %v3783_v61, %v1553_v53  ;;  %v1555_v18 = vrot.slane %v1553_v53, 4  ;;  %v883_v50 = vrot.slane %v881_v52, 4  ;;  %v869_v21 = vsel %vm4934_vm3, %v864_v44, %v868_v54  ;;  %v5333_v49 = vld [vmem:[%s4901_s12 + $0xb4] sm:$0xf]  ;;  %v5345_v44 = vld [vmem:[%s4901_s12 + $0xb8] sm:$0xf] }
  0x5c   : > { %v879_v17 = vsel %vm4934_vm3, %v874_v13, %v878_v35  ;;  %v886_v60 = vrot.slane %v884_v31, 5  ;;  %v892_v14 = vrot.slane %v890_v57, 5  ;;  %v896_v53 = vrot.slane %v894_v36, 4 }
  0x5d   : > { %v5335_v48 = vcombine.low %v869_v21, %v879_v17  ;;  %v1557_v61 = vsel %vm5118_vm6, %v1555_v18, %v1556_v24  ;;  %v900_v52 = vshll.u32 %v5321_v11, 16  ;;  %v3784_v54 = vrot.slane %v5060_v30, 9  ;;  %v5351_v24 = vld [vmem:[%s4901_s12 + $0xbc] sm:$0x1] }
  0x5e   : > { %v5340_v3 = vcombine.low %v1554_v25, %v1557_v61  ;;  %v887_v46 = vor.u32 %v886_v60, %v883_v50  ;;  %v1560_v35 = vrot.slane %v5065_v38, 5  ;;  %v897_v13 = vor.u32 %v896_v53, %v892_v14 }
  0x5f   : > { %6049 = vst [vmem:[#allocation20_spill] sm:$0xff] %v5335_v48  ;;  %4203 = vmatmul.mubr.msk.bf16.gmra.mrb[24].mxu1 %vm985_vm2, %v5335_v48  ;;  %v902_v31 = vrot.slane %v900_v52, 5  ;;  %v1563_v57 = vrot.slane %v5078_v55, 5  ;;  %v905_v18 = vshrl.u32 %v5333_v49, 16  ;;  %v908_v21 = vshll.u32 %v5333_v49, 16 }
  0x60   : > { %6050 = vst [vmem:[#allocation21_spill] sm:$0xff] %v5340_v3  ;;  %4357 = vmatmul.mubr.msk.bf16.gmra.mrb[8].mxu0 %vm985_vm2, %v5340_v3  ;;  %v888_v25 = vrot.slane %v887_v46, 4  ;;  %v1561_v50 = vsel %vm5118_vm6, %v3784_v54, %v1560_v35  ;;  %v1562_v36 = vrot.slane %v1560_v35, 4  ;;  %v898_v17 = vrot.slane %v897_v13, 4 }
  0x61   : > { %v907_v60 = vrot.slane %v905_v18, 4  ;;  %v914_v61 = vshll.u32 %v5345_v44, 16  ;;  %v918_v55 = vshrl.u32 %v5345_v44, 16  ;;  %v910_v48 = vrot.slane %v908_v21, 5 }
  0x62   : > { %v893_v53 = vsel %vm4934_vm3, %v888_v25, %v892_v14  ;;  %v1564_v52 = vsel %vm5118_vm6, %v1562_v36, %v1563_v57  ;;  %v924_v46 = vshll.u32 %v5351_v24, 16  ;;  %v903_v54 = vsel %vm4934_vm3, %v898_v17, %v902_v31 }
  0x63   : > { %v5368_v35 = vcombine.low %v1561_v50, %v1564_v52  ;;  %v916_v13 = vrot.slane %v914_v61, 5  ;;  %v920_v18 = vrot.slane %v918_v55, 4  ;;  %v5370_v3 = vcombine.low %v893_v53, %v903_v54 }
  0x64   : > { %v911_v45 = vor.u32 %v910_v48, %v907_v60  ;;  %v926_v8 = vrot.slane %v924_v46, 5  ;;  %v3785_v30 = vrot.slane %v5082_v62, 9  ;;  %v1567_v57 = vrot.slane %v5087_v15, 5 }
  0x65   : > { %4360 = vmatprep.mubr.msk.bf16.mxu0 %vm985_vm2, %v5368_v35  ;;  %v921_v14 = vor.u32 %v920_v18, %v916_v13  ;;  %v1570_v25 = vrot.slane %v5101_v34, 5  ;;  %v3786_v31 = vrot.slane %v5109_v42, 9  ;;  %4206 = vmatprep.mubr.msk.bf16.mxu1 %vm985_vm2, %v5370_v3  ;;  %v3744_v48 = vcombine.low %v4905_v4, %v4908_v5 }
  0x66   : > { %v912_v50 = vrot.slane %v911_v45, 4  ;;  %v1574_v36 = vrot.slane %v5123_v1, 5  ;;  %v1577_v21 = vrot.slane %v5132_v22, 5  ;;  %v1568_v60 = vsel %vm5118_vm6, %v3785_v30, %v1567_v57 }
  0x67   : > { %v922_v17 = vrot.slane %v921_v14, 4  ;;  %v1569_v61 = vrot.slane %v1567_v57, 4  ;;  %v1581_v34 = vrot.slane %v5166_v20, 5  ;;  %v3787_v4 = vrot.slane %v5150_v0, 9 }
  0x68   : > { %v917_v55 = vsel %vm4934_vm3, %v912_v50, %v916_v13  ;;  %v1575_v45 = vsel %vm5118_vm6, %v3786_v31, %v1574_v36  ;;  %v1576_v53 = vrot.slane %v1574_v36, 4  ;;  %v1584_v30 = vrot.slane %v5171_v29, 5 }
  0x69   : > { %v927_v5 = vsel %vm4934_vm3, %v922_v17, %v926_v8  ;;  %v1571_v22 = vsel %vm5118_vm6, %v1569_v61, %v1570_v25  ;;  %v1583_v52 = vrot.slane %v1581_v34, 4  ;;  %v3788_v14 = vrot.slane %v5197_v58, 9 }
  0x6a   : > { %v5397_v46 = vcombine.low %v917_v55, %v927_v5  ;;  %v5399_v54 = vcombine.low %v1568_v60, %v1571_v22  ;;  %v1578_v13 = vsel %vm5118_vm6, %v1576_v53, %v1577_v21  ;;  %v1588_v57 = vrot.slane %v5203_v26, 5  ;;  %v5441_v22 = vld [vmem:[%s5993_s3 + $0x18] sm:$0xff]  }
  0x6b   : > { %v5403_v18 = vcombine.low %v1575_v45, %v1578_v13  ;;  %v1591_v29 = vrot.slane %v5213_v59, 5  ;;  %v1582_v8 = vsel %vm5118_vm6, %v3787_v4, %v1581_v34  ;;  %v1585_v25 = vsel %vm5118_vm6, %v1583_v52, %v1584_v30 }
  0x6c   : > { %4207 = vmatmul.mubr.msk.bf16.gmra.mrb[28].mxu1 %vm985_vm2, %v5397_v46  ;;  %4361 = vmatmul.mubr.msk.bf16.gmra.mrb[12].mxu0 %vm985_vm2, %v5399_v54  ;;  %v1590_v31 = vrot.slane %v1588_v57, 4  ;;  %v1595_v50 = vrot.slane %v5246_v40, 5  ;;  %v1602_v36 = vrot.slane %v5275_v16, 5  ;;  %v1589_v21 = vsel %vm5118_vm6, %v3788_v14, %v1588_v57 }
  0x6d   : > { %4212 = vmatprep.mubr.msk.bf16.mxu1 %vm985_vm2, %v3744_v48  ;;  %4364 = vmatprep.mubr.msk.bf16.mxu0 %vm985_vm2, %v5403_v18  ;;  %v5425_v48 = vcombine.low %v1582_v8, %v1585_v25  ;;  %v3789_v17 = vrot.slane %v5232_v39, 9  ;;  %v1598_v61 = vrot.slane %v5251_v2, 5  ;;  %v5431_v34 = vcombine.low %v4930_v27, %v4943_v33 }
  0x6e   : > { %v1592_v59 = vsel %vm5118_vm6, %v1590_v31, %v1591_v29  ;;  %v1597_v60 = vrot.slane %v1595_v50, 4  ;;  %v3790_v55 = vrot.slane %v5268_v47, 9  ;;  %v1604_v53 = vrot.slane %v1602_v36, 4 }
  0x6f   : > { %v5434_v45 = vcombine.low %v1589_v21, %v1592_v59  ;;  %v1605_v4 = vrot.slane %v5288_v41, 5  ;;  %v1609_v5 = vrot.slane %v5307_v23, 5  ;;  %v1596_v27 = vsel %vm5118_vm6, %v3789_v17, %v1595_v50 }
  0x70   : > { %v1599_v33 = vsel %vm5118_vm6, %v1597_v60, %v1598_v61  ;;  %v5457_v2 = vcombine.low %v4957_v51, %v4962_v56  ;;  %v1603_v41 = vsel %vm5118_vm6, %v3790_v55, %v1602_v36  ;;  %v3791_v52 = vrot.slane %v5298_v10, 9 }
  0x71   : > { %v5464_v30 = vcombine.low %v5082_v62, %v5087_v15  ;;  %v1616_v13 = vrot.slane %v5345_v44, 5  ;;  %v5473_v51 = vcombine.low %v5109_v42, %v5123_v1  ;;  %v5477_v56 = vcombine.low %v5150_v0, %v5166_v20 }
  0x72   : > { %v5479_v14 = vcombine.low %v1596_v27, %v1599_v33  ;;  %v1611_v62 = vrot.slane %v1609_v5, 4  ;;  %v1612_v15 = vrot.slane %v5321_v11, 5  ;;  %v5487_v57 = vcombine.low %v5197_v58, %v5203_v26  ;;  %v5533_v11 = vld [vmem:[%s442_s28] sm:$0xf] }
  0x73   : > { %v5492_v42 = vcombine.low %v5232_v39, %v5246_v40  ;;  %v5496_v1 = vcombine.low %v5268_v47, %v5275_v16  ;;  %v5500_v0 = vcombine.low %v5298_v10, %v5307_v23  ;;  %v5504_v20 = vcombine.low %v5333_v49, %v5345_v44  ;;  %v5514_v47 = vld [vmem:[%s442_s28 + $0x4] sm:$0xf]  ;;  %v535_v44 = vld [vmem:[%s442_s28 + $0x8] sm:$0x1] }
  0x74   : > { %4213 = vmatmul.mubr.msk.bf16.vlgmr.msra.gmra.mrb[0].mxu1 %vm985_vm2, %v4940_v32  ;;  %4365 = vmatmul.mubr.msk.bf16.gmra.mrb[16].mxu0 %vm985_vm2, %v5425_v48  ;;  %v5508_v58 = vcombine.low %v4976_v6, %v4988_v19  ;;  %v3792_v39 = vrot.slane %v5333_v49, 9  ;;  %v1618_v40 = vrot.slane %v1616_v13, 4  ;;  %v1619_v16 = vrot.slane %v5351_v24, 5 }
  0x75   : > { %4245 = vmatpush3.bf16.msra.mxu1 %v4983_v12  ;;  %4216 = vmatprep.mubr.msk.bf16.mxu1 %vm985_vm2, %v5431_v34  ;;  %v1606_v12 = vsel %vm5118_vm6, %v1604_v53, %v1605_v4  ;;  %v1610_v10 = vsel %vm5118_vm6, %v3791_v52, %v1609_v5  ;;  %v1613_v6 = vsel %vm5118_vm6, %v1611_v62, %v1612_v15  ;;  %v2364_v19 = vrot.slane %v5514_v47, 5  ;;  %v6051_v52 = vld [vmem:[#allocation4_spill] sm:$0xff] }
  0x76   : > { %4368 = vmatprep.mubr.msk.bf16.mxu0 %vm985_vm2, %v5434_v45  ;;  %4278 = vmatprep.subr.bf16.mxu1 %v5441_v22  ;;  %v5510_v26 = vcombine.low %v1603_v41, %v1606_v12  ;;  %v1617_v23 = vsel %vm5118_vm6, %v3792_v39, %v1616_v13  ;;  %v1620_v49 = vsel %vm5118_vm6, %v1618_v40, %v1619_v16  ;;  %v2130_v25 = vshrl.u32 %v5533_v11, 16  ;;  %v6052_v40 = vld [vmem:[#allocation13_spill] sm:$0xff]  ;;  %v4794_v16 = vld [vmem:[%s4901_s12 + $0x4] sm:$0xf] }
  0x77   : > { %v5537_v24 = vcombine.low %v5003_v37, %v5010_v43  ;;  %v5539_v29 = vcombine.low %v1610_v10, %v1613_v6  ;;  %v5543_v8 = vcombine.low %v5032_v63, %v5039_v9  ;;  %v2133_v31 = vshll.u32 %v5533_v11, 16  ;;  %v4795_v6 = vld [vmem:[%s4901_s12 + $0x8] sm:$0x1] }
  0x78   : > { %v2139_v50 = vshll.u32 %v5514_v47, 16  ;;  %v2143_v36 = vshrl.u32 %v5514_v47, 16  ;;  %v5549_v21 = vcombine.low %v1617_v23, %v1620_v49  ;;  %v3868_v59 = vrot.slane %v5533_v11, 9  ;;  %v4796_v23 = vld [vmem:[%s4901_s12] sm:$0xf] }
  0x79   : > { %v2366_v37 = vrot.slane %v2364_v19, 4  ;;  %v2367_v43 = vrot.slane %v535_v44, 5  ;;  %v2132_v17 = vrot.slane %v2130_v25, 4  ;;  %v2135_v60 = vrot.slane %v2133_v31, 5 }
  0x7a   : > { %v2141_v61 = vrot.slane %v2139_v50, 5  ;;  %v2145_v55 = vrot.slane %v2143_v36, 4  ;;  %v2149_v53 = vshll.u32 %v535_v44, 16  ;;  %v2365_v4 = vsel %vm5118_vm6, %v3868_v59, %v2364_v19  ;;  %v6053_v36 = vld [vmem:[#allocation9_spill] sm:$0xff]  ;;  %v6054_v59 = vld [vmem:[#allocation11_spill] sm:$0xff] }
  0x7b   : > { %v2136_v63 = vor.u32 %v2135_v60, %v2132_v17  ;;  %v2368_v5 = vsel %vm5118_vm6, %v2366_v37, %v2367_v43  ;;  %v5566_v12 = vcombine.low %v6051_v52, %v5065_v38  ;;  %v4793_v38 = vld [vmem:[%s5993_s3 + $0x40] sm:$0xff]   ;;  %v1511_v10 = vrot.slane %v4794_v16, 5  ;;  %v6056_v17 = vld [vmem:[#allocation16_spill] sm:$0xff]  ;;  %v6057_v60 = vld [vmem:[#allocation19_spill] sm:$0xff] }
  0x7c   : > { %4217 = vmatmul.mubr.msk.bf16.gmra.mrb[4].mxu1 %vm985_vm2, %v5457_v2  ;;  %4369 = vmatmul.mubr.msk.bf16.gmra.mrb[20].mxu0 %vm985_vm2, %v5479_v14  ;;  %v2146_v9 = vor.u32 %v2145_v55, %v2141_v61  ;;  %v2151_v41 = vrot.slane %v2149_v53, 5  ;;  %v5568_v13 = vcombine.low %v2365_v4, %v2368_v5  ;;  %v1514_v19 = vrot.slane %v4795_v6, 5  ;;  %v4797_v37 = vld [vmem:[%s5993_s3 + $0x20] sm:$0xff]   ;;  %v6061_v53 = vld [vmem:[#allocation5_spill] sm:$0xff]  ;;  %v6063_v5 = vld [vmem:[#allocation7_spill] sm:$0xff] }
  0x7d   : > { %4220 = vmatprep.mubr.msk.bf16.mxu1 %vm985_vm2, %v5508_v58  ;;  %4372 = vmatprep.mubr.msk.bf16.mxu0 %vm985_vm2, %v5510_v26  ;;  %v2137_v27 = vrot.slane %v2136_v63, 4  ;;  %v3777_v49 = vrot.slane %v4796_v23, 9  ;;  %v1513_v44 = vrot.slane %v1511_v10, 4  ;;  %v6055_v43 = vld [vmem:[#allocation14_spill] sm:$0xff]  ;;  %v6067_v52 = vld [vmem:[#allocation15_spill] sm:$0xff] }
  0x7e   : > { %v2147_v33 = vrot.slane %v2146_v9, 4  ;;  %v6059_v63 = vld [vmem:[#allocation2_spill] sm:$0xff]  ;;  %v6060_v9 = vld [vmem:[#allocation3_spill] sm:$0xff] }
  0x7f   : > { %v2142_v62 = vsel %vm4934_vm3, %v2137_v27, %v2141_v61  ;;  %v1512_v25 = vsel %vm5118_vm6, %v3777_v49, %v1511_v10  ;;  %v1515_v31 = vsel %vm5118_vm6, %v1513_v44, %v1514_v19  ;;  %v6058_v61 = vld [vmem:[#allocation21_spill] sm:$0xff]  ;;  %v6062_v4 = vld [vmem:[#allocation6_spill] sm:$0xff]  ;;  %v6064_v27 = vld [vmem:[#allocation8_spill] sm:$0xff] }
  0x80   : > { %v2152_v15 = vsel %vm4934_vm3, %v2147_v33, %v2151_v41  ;;  %v3795_v50 = vcombine.low %v1512_v25, %v1515_v31  ;;  %v6065_v33 = vld [vmem:[#allocation10_spill] sm:$0xff]  ;;  %v6066_v41 = vld [vmem:[#allocation12_spill] sm:$0xff]  ;;  %v538_v23 = vld [vmem:[%s5654_s13 + $0x8] sm:$0x1] }
  0x81   : > { %v5574_v39 = vcombine.low %v2142_v62, %v2152_v15  ;;  %v6068_v62 = vld [vmem:[#allocation17_spill] sm:$0xff]  ;;  %v6069_v16 = vld [vmem:[#allocation18_spill] sm:$0xff]  ;;  %v6070_v49 = vld [vmem:[#allocation20_spill] sm:$0xff]  ;;  %v2807_v25 = vshll.u32 %v538_v23, 16 }
  0x84   : > { %4221 = vmatmul.mubr.msk.bf16.gmra.mrb[8].mxu1 %vm985_vm2, %v5537_v24  ;;  %4373 = vmatmul.mubr.msk.bf16.gmra.mrb[24].mxu0 %vm985_vm2, %v5539_v29 }
  0x85   : > { %4224 = vmatprep.mubr.msk.bf16.mxu1 %vm985_vm2, %v5543_v8  ;;  %4376 = vmatprep.mubr.msk.bf16.mxu0 %vm985_vm2, %v5549_v21 }
  0x8c   : > { %4225 = vmatmul.mubr.msk.bf16.gmra.mrb[12].mxu1 %vm985_vm2, %v5566_v12  ;;  %4377 = vmatmul.mubr.msk.bf16.gmra.mrb[28].mxu0 %vm985_vm2, %v5568_v13 }
  0x8d   : > { %4228 = vmatprep.mubr.msk.bf16.mxu1 %vm985_vm2, %v5464_v30  ;;  %4382 = vmatprep.mubr.msk.bf16.mxu0 %vm985_vm2, %v5431_v34 }
  0x94   : > { %4229 = vmatmul.mubr.msk.bf16.gmra.mrb[16].mxu1 %vm985_vm2, %v5473_v51  ;;  %4383 = vmatmul.mubr.msk.bf16.vlgmr.msra.gmra.mrb[0].mxu0 %vm985_vm2, %v5457_v2 }
  0x95   : > { %4415 = vmatpush3.bf16.msra.mxu0 %v6052_v40  ;;  %4232 = vmatprep.mubr.msk.bf16.mxu1 %vm985_vm2, %v5477_v56 }
  0x96   : > { %4386 = vmatprep.mubr.msk.bf16.mxu0 %vm985_vm2, %v5508_v58  ;;  %4448 = vmatprep.subr.bf16.mxu0 %v4793_v38 }
  0x9c   : > { %4233 = vmatmul.mubr.msk.bf16.gmra.mrb[20].mxu1 %vm985_vm2, %v5487_v57  ;;  %4387 = vmatmul.mubr.msk.bf16.gmra.mrb[4].mxu0 %vm985_vm2, %v5537_v24 }
  0x9d   : > { %4236 = vmatprep.mubr.msk.bf16.mxu1 %vm985_vm2, %v5492_v42  ;;  %4390 = vmatprep.mubr.msk.bf16.mxu0 %vm985_vm2, %v5543_v8 }
  0xa4   : > { %4237 = vmatmul.mubr.msk.bf16.gmra.mrb[24].mxu1 %vm985_vm2, %v5496_v1  ;;  %4391 = vmatmul.mubr.msk.bf16.gmra.mrb[8].mxu0 %vm985_vm2, %v5566_v12 }
  0xa5   : > { %4240 = vmatprep.mubr.msk.bf16.mxu1 %vm985_vm2, %v5500_v0  ;;  %4394 = vmatprep.mubr.msk.bf16.mxu0 %vm985_vm2, %v5464_v30 }
  0xac   : > { %4241 = vmatmul.mubr.msk.bf16.gmra.mrb[28].mxu1 %vm985_vm2, %v5504_v20  ;;  %4395 = vmatmul.mubr.msk.bf16.gmra.mrb[12].mxu0 %vm985_vm2, %v5473_v51 }
  0xad   : > { %4246 = vmatprep.mubr.msk.bf16.mxu1 %vm985_vm2, %v3795_v50  ;;  %4398 = vmatprep.mubr.msk.bf16.mxu0 %vm985_vm2, %v5477_v56 }
  0xb4   : > { %4247 = vmatmul.mubr.msk.bf16.vlgmr.msra.gmra.mrb[0].mxu1 %vm985_vm2, %v6053_v36  ;;  %4399 = vmatmul.mubr.msk.bf16.gmra.mrb[16].mxu0 %vm985_vm2, %v5487_v57  ;;  %v2809_v36 = vrot.slane %v2807_v25, 5 }
  0xb5   : > { %4279 = vmatpush3.bf16.msra.mxu1 %v5441_v22  ;;  %4250 = vmatprep.mubr.msk.bf16.mxu1 %vm985_vm2, %v6054_v59  ;;  %v5649_v22 = vcombine.low %v5533_v11, %v5514_v47  ;;  %v5665_v47 = vld [vmem:[%s5654_s13] sm:$0xf]  ;;  %v5668_v11 = vld [vmem:[%s5654_s13 + $0x4] sm:$0xf] }
  0xb6   : > { %4402 = vmatprep.mubr.msk.bf16.mxu0 %vm985_vm2, %v5492_v42  ;;  %4482 = vmatprep.subr.bf16.mxu1 %v4797_v37  ;;  %v3891_v55 = vcombine.low %v5665_v47, %v5668_v11  ;;  %v2788_v15 = vshrl.u32 %v5665_v47, 16  ;;  %v2801_v40 = vshrl.u32 %v5668_v11, 16  ;;  %v3022_v28 = vrot.slane %v5668_v11, 5 }
  0xb8   : > { %v2790_v10 = vrot.slane %v2788_v15, 4  ;;  %v2803_v19 = vrot.slane %v2801_v40, 4 }
  0xbc   : > { %4251 = vmatmul.mubr.msk.bf16.gmra.mrb[4].mxu1 %vm985_vm2, %v6055_v43  ;;  %4403 = vmatmul.mubr.msk.bf16.gmra.mrb[20].mxu0 %vm985_vm2, %v5496_v1 }
  0xbd   : > { %4254 = vmatprep.mubr.msk.bf16.mxu1 %vm985_vm2, %v6056_v17  ;;  %4406 = vmatprep.mubr.msk.bf16.mxu0 %vm985_vm2, %v5500_v0 }
  0xc4   : > { %4255 = vmatmul.mubr.msk.bf16.gmra.mrb[8].mxu1 %vm985_vm2, %v6057_v60  ;;  %4407 = vmatmul.mubr.msk.bf16.gmra.mrb[24].mxu0 %vm985_vm2, %v5504_v20 }
  0xc5   : > { %4258 = vmatprep.mubr.msk.bf16.mxu1 %vm985_vm2, %v6058_v61  ;;  %4410 = vmatprep.mubr.msk.bf16.mxu0 %vm985_vm2, %v5649_v22 }
  0xcc   : > { %4259 = vmatmul.mubr.msk.bf16.gmra.mrb[12].mxu1 %vm985_vm2, %v5368_v35  ;;  %4411 = vmatmul.mubr.msk.bf16.gmra.mrb[28].mxu0 %vm985_vm2, %v3891_v55 }
  0xcd   : > { %4262 = vmatprep.mubr.msk.bf16.mxu1 %vm985_vm2, %v5399_v54  ;;  %4416 = vmatprep.mubr.msk.bf16.mxu0 %vm985_vm2, %v6059_v63 }
  0xd4   : > { %4263 = vmatmul.mubr.msk.bf16.gmra.mrb[16].mxu1 %vm985_vm2, %v5403_v18  ;;  %4417 = vmatmul.mubr.msk.bf16.vlgmr.msra.gmra.mrb[0].mxu0 %vm985_vm2, %v6060_v9 }
  0xd5   : > { %4449 = vmatpush3.bf16.msra.mxu0 %v4793_v38  ;;  %4266 = vmatprep.mubr.msk.bf16.mxu1 %vm985_vm2, %v5425_v48  ;;  %v2791_v38 = vshll.u32 %v5665_v47, 16 }
  0xd6   : > { %4420 = vmatprep.mubr.msk.bf16.mxu0 %vm985_vm2, %v6061_v53 }
  0xdc   : > { %4267 = vmatmul.mubr.msk.bf16.gmra.mrb[20].mxu1 %vm985_vm2, %v5434_v45  ;;  %4421 = vmatmul.mubr.msk.bf16.gmra.mrb[4].mxu0 %vm985_vm2, %v6062_v4 }
  0xdd   : > { %4270 = vmatprep.mubr.msk.bf16.mxu1 %vm985_vm2, %v5479_v14  ;;  %4424 = vmatprep.mubr.msk.bf16.mxu0 %vm985_vm2, %v6063_v5 }
  0xe4   : > { %4271 = vmatmul.mubr.msk.bf16.gmra.mrb[24].mxu1 %vm985_vm2, %v5510_v26  ;;  %4425 = vmatmul.mubr.msk.bf16.gmra.mrb[8].mxu0 %vm985_vm2, %v6064_v27 }
  0xe5   : > { %4274 = vmatprep.mubr.msk.bf16.mxu1 %vm985_vm2, %v5539_v29  ;;  %4428 = vmatprep.mubr.msk.bf16.mxu0 %vm985_vm2, %v6065_v33 }
  0xec   : > { %4275 = vmatmul.mubr.msk.bf16.gmra.mrb[28].mxu1 %vm985_vm2, %v5549_v21  ;;  %4429 = vmatmul.mubr.msk.bf16.gmra.mrb[12].mxu0 %vm985_vm2, %v6066_v41 }
  0xed   : > { %4280 = vmatprep.mubr.msk.bf16.mxu1 %vm985_vm2, %v4940_v32  ;;  %4432 = vmatprep.mubr.msk.bf16.mxu0 %vm985_vm2, %v6067_v52  ;;  %v2797_v32 = vshll.u32 %v5668_v11, 16 }
  0xef   : > { %v2799_v6 = vrot.slane %v2797_v32, 5 }
  0xf1   : > { %v2804_v44 = vor.u32 %v2803_v19, %v2799_v6 }
  0xf3   : > { %v2805_v50 = vrot.slane %v2804_v44, 4 }
  0xf4   : > { %4281 = vmatmul.mubr.msk.bf16.vlgmr.msra.gmra.mrb[0].mxu1 %vm985_vm2, %v5431_v34  ;;  %4433 = vmatmul.mubr.msk.bf16.gmra.mrb[16].mxu0 %vm985_vm2, %v6068_v62  ;;  %v2793_v34 = vrot.slane %v2791_v38, 5 }
  0xf5   : > { %4483 = vmatpush3.bf16.msra.mxu1 %v4797_v37  ;;  %4284 = vmatprep.mubr.msk.bf16.mxu1 %vm985_vm2, %v5457_v2 }
  0xf6   : > { %4436 = vmatprep.mubr.msk.bf16.mxu0 %vm985_vm2, %v6069_v16  ;;  %v2794_v2 = vor.u32 %v2793_v34, %v2790_v10 }
  0xf8   : > { %v2795_v31 = vrot.slane %v2794_v2, 4 }
  0xfc   : > { %4285 = vmatmul.mubr.msk.bf16.gmra.mrb[4].mxu1 %vm985_vm2, %v5508_v58  ;;  %4437 = vmatmul.mubr.msk.bf16.gmra.mrb[20].mxu0 %vm985_vm2, %v6070_v49  ;;  %v2800_v58 = vsel %vm4934_vm3, %v2795_v31, %v2799_v6 }
  0xfd   : > { %4288 = vmatprep.mubr.msk.bf16.mxu1 %vm985_vm2, %v5537_v24  ;;  %4440 = vmatprep.mubr.msk.bf16.mxu0 %vm985_vm2, %v5370_v3  ;;  %v2810_v24 = vsel %vm4934_vm3, %v2805_v50, %v2809_v36 }
  0xfe   : > { %v3911_v37 = vcombine.low %v2800_v58, %v2810_v24 }
 0x104   : > { %4289 = vmatmul.mubr.msk.bf16.gmra.mrb[8].mxu1 %vm985_vm2, %v5543_v8  ;;  %4441 = vmatmul.mubr.msk.bf16.gmra.mrb[24].mxu0 %vm985_vm2, %v5397_v46 }
 0x105   : > { %4292 = vmatprep.mubr.msk.bf16.mxu1 %vm985_vm2, %v5566_v12  ;;  %4444 = vmatprep.mubr.msk.bf16.mxu0 %vm985_vm2, %v5574_v39 }
 0x10c   : > { %4293 = vmatmul.mubr.msk.bf16.gmra.mrb[12].mxu1 %vm985_vm2, %v5464_v30  ;;  %4445 = vmatmul.mubr.msk.bf16.gmra.mrb[28].mxu0 %vm985_vm2, %v3911_v37 }
 0x10d   : > { %4296 = vmatprep.mubr.msk.bf16.mxu1 %vm985_vm2, %v5473_v51  ;;  %4450 = vmatprep.mubr.msk.bf16.mxu0 %vm985_vm2, %v6054_v59 }
 0x114   : > { %4297 = vmatmul.mubr.msk.bf16.gmra.mrb[16].mxu1 %vm985_vm2, %v5477_v56  ;;  %4451 = vmatmul.mubr.msk.bf16.vlgmr.msra.gmra.mrb[0].mxu0 %vm985_vm2, %v6055_v43 }
 0x115   : > { %4300 = vmatprep.mubr.msk.bf16.mxu1 %vm985_vm2, %v5487_v57  ;;  %4454 = vmatprep.mubr.msk.bf16.mxu0 %vm985_vm2, %v6056_v17  ;;  %v5838_v17 = vld [vmem:[%s5995_s5] ss:$0 sm:$0xff] }
 0x11c   : > { %4301 = vmatmul.mubr.msk.bf16.gmra.mrb[20].mxu1 %vm985_vm2, %v5492_v42  ;;  %4455 = vmatmul.mubr.msk.bf16.gmra.mrb[4].mxu0 %vm985_vm2, %v6057_v60 }
 0x11d   : > { %4304 = vmatprep.mubr.msk.bf16.mxu1 %vm985_vm2, %v5496_v1  ;;  %4458 = vmatprep.mubr.msk.bf16.mxu0 %vm985_vm2, %v6058_v61 }
 0x124   : > { %4305 = vmatmul.mubr.msk.bf16.gmra.mrb[24].mxu1 %vm985_vm2, %v5500_v0  ;;  %4459 = vmatmul.mubr.msk.bf16.gmra.mrb[8].mxu0 %vm985_vm2, %v5368_v35  ;;  %v3929_v35 = vrot.slane %v5665_v47, 9 }
 0x125   : > { %4308 = vmatprep.mubr.msk.bf16.mxu1 %vm985_vm2, %v5504_v20  ;;  %4462 = vmatprep.mubr.msk.bf16.mxu0 %vm985_vm2, %v5399_v54  ;;  %v3024_v54 = vrot.slane %v3022_v28, 4 }
 0x12c   : > { %4309 = vmatmul.mubr.msk.bf16.gmra.mrb[28].mxu1 %vm985_vm2, %v5649_v22  ;;  %4463 = vmatmul.mubr.msk.bf16.gmra.mrb[12].mxu0 %vm985_vm2, %v5403_v18  ;;  %v3025_v18 = vrot.slane %v538_v23, 5 }
 0x12d   : > { %4330 = vmatprep.mubr.msk.bf16.mxu1 %vm985_vm2, %v6066_v41  ;;  %4466 = vmatprep.mubr.msk.bf16.mxu0 %vm985_vm2, %v5425_v48  ;;  %v3023_v48 = vsel %vm5118_vm6, %v3929_v35, %v3022_v28 }
 0x134   : > { %4331 = vmatmul.mubr.msk.bf16.vlgmr.msra.gmra.mrb[16].mxu1 %vm985_vm2, %v6067_v52  ;;  %4467 = vmatmul.mubr.msk.bf16.gmra.mrb[16].mxu0 %vm985_vm2, %v5434_v45  ;;  %v3026_v45 = vsel %vm5118_vm6, %v3024_v54, %v3025_v18 }
 0x135   : > { %4334 = vmatprep.mubr.msk.bf16.mxu1 %vm985_vm2, %v6068_v62  ;;  %4470 = vmatprep.mubr.msk.bf16.mxu0 %vm985_vm2, %v5479_v14  ;;  %v3932_v30 = vcombine.low %v3023_v48, %v3026_v45 }
 0x13c   : > { %4335 = vmatmul.mubr.msk.bf16.gmra.mrb[20].mxu1 %vm985_vm2, %v6069_v16  ;;  %4471 = vmatmul.mubr.msk.bf16.gmra.mrb[20].mxu0 %vm985_vm2, %v5510_v26 }
 0x13d   : > { %4338 = vmatprep.mubr.msk.bf16.mxu1 %vm985_vm2, %v6070_v49  ;;  %4474 = vmatprep.mubr.msk.bf16.mxu0 %vm985_vm2, %v5539_v29 }
 0x144   : > { %4339 = vmatmul.mubr.msk.bf16.gmra.mrb[24].mxu1 %vm985_vm2, %v5370_v3  ;;  %4475 = vmatmul.mubr.msk.bf16.gmra.mrb[24].mxu0 %vm985_vm2, %v5549_v21 }
 0x145   : > { %4342 = vmatprep.mubr.msk.bf16.mxu1 %vm985_vm2, %v5397_v46  ;;  %4478 = vmatprep.mubr.msk.bf16.mxu0 %vm985_vm2, %v5568_v13 }
 0x14c   : > { %4343 = vmatmul.mubr.msk.bf16.gmra.mrb[28].mxu1 %vm985_vm2, %v5574_v39  ;;  %4479 = vmatmul.mubr.msk.bf16.gmra.mrb[28].mxu0 %vm985_vm2, %v3932_v30  ;;  %v5833_v39 = vld [vmem:[%s5994_s4] ss:$0 sm:$0xff] }
 0x1c7   : > { %v4282_v3 = vpop.f32.mrb[0].mxu1 }
 0x1c8   : > { %v1970_v51 = vpop.f32.mrb[1].mxu1 }
 0x1c9   : > { %v4283_v56 = vpop.f32.mrb[2].mxu1 }
 0x1ca   : > { %v1973_v14 = vpop.f32.mrb[3].mxu1 }
 0x1cf   : > { %v4286_v46 = vpop.f32.mrb[4].mxu1 }
 0x1d0   : > { %v1986_v57 = vpop.f32.mrb[5].mxu1 }
 0x1d1   : > { %v4287_v42 = vpop.f32.mrb[6].mxu1 }
 0x1d2   : > { %v1989_v1 = vpop.f32.mrb[7].mxu1 }
 0x1d7   : > { %v4290_v0 = vpop.f32.mrb[8].mxu1 }
 0x1d8   : > { %v5816_v20 = vpop.f32.mrb[9].mxu1 }
 0x1d9   : > { %v5818_v26 = vpop.f32.mrb[10].mxu1 }
 0x1da   : > { %v5820_v7 = vpop.f32.mrb[11].mxu1 }
 0x1df   : > { %v5822_v29 = vpop.f32.mrb[12].mxu1 }
 0x1e0   : > { %v5824_v8 = vpop.f32.mrb[13].mxu1 }
 0x1e1   : > { %v5826_v21 = vpop.f32.mrb[14].mxu1 }
 0x1e2   : > { %v5828_v12 = vpop.f32.mrb[15].mxu1 }
 0x1e7   : > { %v4452_v13 = vpop.f32.mrb[0].mxu0 }
 0x1e8   : > { %v4484_v59 = vadd.f32 %v4452_v13, %v4282_v3  ;;  %v3076_v43 = vpop.f32.mrb[1].mxu0 }
 0x1e9   : > { %v4485_v22 = vadd.f32 %v3076_v43, %v1970_v51  ;;  %v4453_v60 = vpop.f32.mrb[2].mxu0 }
 0x1ea   : > { %v3244_v61 = vmul.f32 %v4484_v59, %v5833_v39  ;;  %v4486_v47 = vadd.f32 %v4453_v60, %v4283_v56  ;;  %v3079_v11 = vpop.f32.mrb[3].mxu0 }
 0x1eb   : > { %v3242_v55 = vmul.f32 %v4485_v22, %v5833_v39  ;;  %v4487_v63 = vadd.f32 %v3079_v11, %v1973_v14 }
 0x1ec   : > { %v3283_v9 = vadd.f32 %v5838_v17, %v3244_v61  ;;  %v3245_v53 = vmul.f32 %v4486_v47, %v5833_v39 }
 0x1ed   : > { %v3281_v4 = vadd.f32 %v5838_v17, %v3242_v55  ;;  %v3243_v5 = vmul.f32 %v4487_v63, %v5833_v39 }
 0x1ee   : > { %v3315_v27 = vmax.f32 %v3283_v9, 0.0  ;;  %v3284_v33 = vadd.f32 %v5838_v17, %v3245_v53 }
 0x1ef   : > { %v3313_v41 = vmax.f32 %v3281_v4, 0.0  ;;  %v3282_v52 = vadd.f32 %v5838_v17, %v3243_v5  ;;  %v4456_v62 = vpop.f32.mrb[4].mxu0 }
 0x1f0   : > { %v3993_v15 = vpack.c.bf16 %v3315_v27, %v3315_v27  ;;  %v3316_v38 = vmax.f32 %v3284_v33, 0.0  ;;  %v4488_v40 = vadd.f32 %v4456_v62, %v4286_v46  ;;  %v3092_v32 = vpop.f32.mrb[5].mxu0 }
 0x1f1   : > { %v3991_v16 = vpack.c.bf16 %v3313_v41, %v3313_v41  ;;  %v3314_v10 = vmax.f32 %v3282_v52, 0.0  ;;  %v4489_v34 = vadd.f32 %v3092_v32, %v1986_v57  ;;  %v4457_v6 = vpop.f32.mrb[6].mxu0 }
 0x1f2   : > { %3476 = vst.msk [vmem:[%s5851_s20 + $0x8] sm:$0xf] %vm3473_vm7, %v3993_v15  ;;  %v3994_v19 = vpack.c.bf16 %v3316_v38, %v3316_v38  ;;  %v3248_v23 = vmul.f32 %v4488_v40, %v5833_v39  ;;  %v4490_v49 = vadd.f32 %v4457_v6, %v4287_v42  ;;  %v3095_v2 = vpop.f32.mrb[7].mxu0 }
 0x1f3   : > { %3474 = vst.msk [vmem:[%s5851_s20] sm:$0xf] %vm3473_vm7, %v3991_v16  ;;  %v3992_v44 = vpack.c.bf16 %v3314_v10, %v3314_v10  ;;  %v3246_v25 = vmul.f32 %v4489_v34, %v5833_v39  ;;  %v4491_v31 = vadd.f32 %v3095_v2, %v1989_v1 }
 0x1f4   : > { %3477 = vst.msk [vmem:[%s5851_s20 + $0xc] sm:$0xf] %vm3473_vm7, %v3994_v19  ;;  %v3287_v50 = vadd.f32 %v5838_v17, %v3248_v23  ;;  %v3249_v36 = vmul.f32 %v4490_v49, %v5833_v39 }
 0x1f5   : > { %3475 = vst.msk [vmem:[%s5851_s20 + $0x4] sm:$0xf] %vm3473_vm7, %v3992_v44  ;;  %v3285_v58 = vadd.f32 %v5838_v17, %v3246_v25  ;;  %v3247_v24 = vmul.f32 %v4491_v31, %v5833_v39 }
 0x1f6   : > { %v3319_v37 = vmax.f32 %v3287_v50, 0.0  ;;  %v3288_v28 = vadd.f32 %v5838_v17, %v3249_v36 }
 0x1f7   : > { %v3317_v35 = vmax.f32 %v3285_v58, 0.0  ;;  %v3286_v54 = vadd.f32 %v5838_v17, %v3247_v24  ;;  %v4460_v18 = vpop.f32.mrb[8].mxu0 }
 0x1f8   : > { %v3997_v48 = vpack.c.bf16 %v3319_v37, %v3319_v37  ;;  %v3320_v45 = vmax.f32 %v3288_v28, 0.0  ;;  %v4492_v30 = vadd.f32 %v4460_v18, %v4290_v0  ;;  %v3108_v3 = vpop.f32.mrb[9].mxu0 }
 0x1f9   : > { %v3995_v51 = vpack.c.bf16 %v3317_v35, %v3317_v35  ;;  %v3318_v56 = vmax.f32 %v3286_v54, 0.0  ;;  %v4493_v14 = vadd.f32 %v3108_v3, %v5816_v20  ;;  %v4461_v46 = vpop.f32.mrb[10].mxu0 }
 0x1fa   : > { %3480 = vst.msk [vmem:[%s5851_s20 + $0x18] sm:$0xf] %vm3473_vm7, %v3997_v48  ;;  %v3998_v57 = vpack.c.bf16 %v3320_v45, %v3320_v45  ;;  %v3252_v42 = vmul.f32 %v4492_v30, %v5833_v39  ;;  %v4494_v1 = vadd.f32 %v4461_v46, %v5818_v26  ;;  %v3111_v13 = vpop.f32.mrb[11].mxu0 }
 0x1fb   : > { %3478 = vst.msk [vmem:[%s5851_s20 + $0x10] sm:$0xf] %vm3473_vm7, %v3995_v51  ;;  %v3996_v59 = vpack.c.bf16 %v3318_v56, %v3318_v56  ;;  %v3250_v0 = vmul.f32 %v4493_v14, %v5833_v39  ;;  %v4495_v43 = vadd.f32 %v3111_v13, %v5820_v7 }
 0x1fc   : > { %3481 = vst.msk [vmem:[%s5851_s20 + $0x1c] sm:$0xf] %vm3473_vm7, %v3998_v57  ;;  %v3291_v20 = vadd.f32 %v5838_v17, %v3252_v42  ;;  %v3253_v22 = vmul.f32 %v4494_v1, %v5833_v39 }
 0x1fd   : > { %3479 = vst.msk [vmem:[%s5851_s20 + $0x14] sm:$0xf] %vm3473_vm7, %v3996_v59  ;;  %v3289_v60 = vadd.f32 %v5838_v17, %v3250_v0  ;;  %v3251_v26 = vmul.f32 %v4495_v43, %v5833_v39 }
 0x1fe   : > { %v3323_v61 = vmax.f32 %v3291_v20, 0.0  ;;  %v3292_v47 = vadd.f32 %v5838_v17, %v3253_v22 }
 0x1ff   : > { %v3321_v11 = vmax.f32 %v3289_v60, 0.0  ;;  %v3290_v7 = vadd.f32 %v5838_v17, %v3251_v26  ;;  %v4464_v55 = vpop.f32.mrb[12].mxu0 }
 0x200   : > { %v4001_v63 = vpack.c.bf16 %v3323_v61, %v3323_v61  ;;  %v3324_v9 = vmax.f32 %v3292_v47, 0.0  ;;  %v4496_v53 = vadd.f32 %v4464_v55, %v5822_v29  ;;  %v3124_v4 = vpop.f32.mrb[13].mxu0 }
 0x201   : > { %v3999_v5 = vpack.c.bf16 %v3321_v11, %v3321_v11  ;;  %v3322_v27 = vmax.f32 %v3290_v7, 0.0  ;;  %v4497_v33 = vadd.f32 %v3124_v4, %v5824_v8  ;;  %v4465_v41 = vpop.f32.mrb[14].mxu0 }
 0x202   : > { %3484 = vst.msk [vmem:[%s5851_s20 + $0x28] sm:$0xf] %vm3473_vm7, %v4001_v63  ;;  %v4002_v52 = vpack.c.bf16 %v3324_v9, %v3324_v9  ;;  %v3256_v62 = vmul.f32 %v4496_v53, %v5833_v39  ;;  %v4498_v15 = vadd.f32 %v4465_v41, %v5826_v21  ;;  %v3127_v38 = vpop.f32.mrb[15].mxu0 }
 0x203   : > { %3482 = vst.msk [vmem:[%s5851_s20 + $0x20] sm:$0xf] %vm3473_vm7, %v3999_v5  ;;  %v4000_v40 = vpack.c.bf16 %v3322_v27, %v3322_v27  ;;  %v3254_v29 = vmul.f32 %v4497_v33, %v5833_v39  ;;  %v4499_v32 = vadd.f32 %v3127_v38, %v5828_v12 }
 0x204   : > { %3485 = vst.msk [vmem:[%s5851_s20 + $0x2c] sm:$0xf] %vm3473_vm7, %v4002_v52  ;;  %v3295_v8 = vadd.f32 %v5838_v17, %v3256_v62  ;;  %v3257_v16 = vmul.f32 %v4498_v15, %v5833_v39 }
 0x205   : > { %3483 = vst.msk [vmem:[%s5851_s20 + $0x24] sm:$0xf] %vm3473_vm7, %v4000_v40  ;;  %v3293_v10 = vadd.f32 %v5838_v17, %v3254_v29  ;;  %v3255_v21 = vmul.f32 %v4499_v32, %v5833_v39 }
 0x206   : > { %v3327_v34 = vmax.f32 %v3295_v8, 0.0  ;;  %v3296_v6 = vadd.f32 %v5838_v17, %v3257_v16 }
 0x207   : > { %v3325_v19 = vmax.f32 %v3293_v10, 0.0  ;;  %v3294_v23 = vadd.f32 %v5838_v17, %v3255_v21  ;;  %v4332_v12 = vpop.f32.mrb[16].mxu1  ;;  %v4468_v49 = vpop.f32.mrb[16].mxu0 }
 0x208   : > { %v4005_v2 = vpack.c.bf16 %v3327_v34, %v3327_v34  ;;  %v3328_v44 = vmax.f32 %v3296_v6, 0.0  ;;  %v4500_v25 = vadd.f32 %v4468_v49, %v4332_v12  ;;  %v2266_v31 = vpop.f32.mrb[17].mxu1  ;;  %v3140_v50 = vpop.f32.mrb[17].mxu0 }
 0x209   : > { %v4003_v36 = vpack.c.bf16 %v3325_v19, %v3325_v19  ;;  %v3326_v58 = vmax.f32 %v3294_v23, 0.0  ;;  %v4501_v24 = vadd.f32 %v3140_v50, %v2266_v31  ;;  %v4333_v37 = vpop.f32.mrb[18].mxu1  ;;  %v4469_v28 = vpop.f32.mrb[18].mxu0 }
 0x20a   : > { %3488 = vst.msk [vmem:[%s5851_s20 + $0x38] sm:$0xf] %vm3473_vm7, %v4005_v2  ;;  %v4006_v35 = vpack.c.bf16 %v3328_v44, %v3328_v44  ;;  %v3260_v54 = vmul.f32 %v4500_v25, %v5833_v39  ;;  %v4502_v18 = vadd.f32 %v4469_v28, %v4333_v37  ;;  %v2269_v48 = vpop.f32.mrb[19].mxu1  ;;  %v3143_v45 = vpop.f32.mrb[19].mxu0 }
 0x20b   : > { %3486 = vst.msk [vmem:[%s5851_s20 + $0x30] sm:$0xf] %vm3473_vm7, %v4003_v36  ;;  %v4004_v30 = vpack.c.bf16 %v3326_v58, %v3326_v58  ;;  %v3258_v3 = vmul.f32 %v4501_v24, %v5833_v39  ;;  %v4503_v51 = vadd.f32 %v3143_v45, %v2269_v48 }
 0x20c   : > { %3489 = vst.msk [vmem:[%s5851_s20 + $0x3c] sm:$0xf] %vm3473_vm7, %v4006_v35  ;;  %v3299_v56 = vadd.f32 %v5838_v17, %v3260_v54  ;;  %v3261_v14 = vmul.f32 %v4502_v18, %v5833_v39 }
 0x20d   : > { %3487 = vst.msk [vmem:[%s5851_s20 + $0x34] sm:$0xf] %vm3473_vm7, %v4004_v30  ;;  %v3297_v46 = vadd.f32 %v5838_v17, %v3258_v3  ;;  %v3259_v57 = vmul.f32 %v4503_v51, %v5833_v39 }
 0x20e   : > { %v3331_v42 = vmax.f32 %v3299_v56, 0.0  ;;  %v3300_v1 = vadd.f32 %v5838_v17, %v3261_v14 }
 0x20f   : > { %v3329_v13 = vmax.f32 %v3297_v46, 0.0  ;;  %v3298_v59 = vadd.f32 %v5838_v17, %v3259_v57  ;;  %v4336_v0 = vpop.f32.mrb[20].mxu1  ;;  %v4472_v43 = vpop.f32.mrb[20].mxu0 }
 0x210   : > { %v4009_v20 = vpack.c.bf16 %v3331_v42, %v3331_v42  ;;  %v3332_v22 = vmax.f32 %v3300_v1, 0.0  ;;  %v4504_v60 = vadd.f32 %v4472_v43, %v4336_v0  ;;  %v2282_v26 = vpop.f32.mrb[21].mxu1  ;;  %v3156_v61 = vpop.f32.mrb[21].mxu0 }
 0x211   : > { %v4007_v47 = vpack.c.bf16 %v3329_v13, %v3329_v13  ;;  %v3330_v11 = vmax.f32 %v3298_v59, 0.0  ;;  %v4505_v7 = vadd.f32 %v3156_v61, %v2282_v26  ;;  %v4337_v55 = vpop.f32.mrb[22].mxu1  ;;  %v4473_v63 = vpop.f32.mrb[22].mxu0 }
 0x212   : > { %3492 = vst.msk [vmem:[%s5851_s20 + $0x48] sm:$0xf] %vm3473_vm7, %v4009_v20  ;;  %v4010_v9 = vpack.c.bf16 %v3332_v22, %v3332_v22  ;;  %v3264_v53 = vmul.f32 %v4504_v60, %v5833_v39  ;;  %v4506_v4 = vadd.f32 %v4473_v63, %v4337_v55  ;;  %v2285_v5 = vpop.f32.mrb[23].mxu1  ;;  %v3159_v27 = vpop.f32.mrb[23].mxu0 }
 0x213   : > { %3490 = vst.msk [vmem:[%s5851_s20 + $0x40] sm:$0xf] %vm3473_vm7, %v4007_v47  ;;  %v4008_v33 = vpack.c.bf16 %v3330_v11, %v3330_v11  ;;  %v3262_v41 = vmul.f32 %v4505_v7, %v5833_v39  ;;  %v4507_v52 = vadd.f32 %v3159_v27, %v2285_v5 }
 0x214   : > { %3493 = vst.msk [vmem:[%s5851_s20 + $0x4c] sm:$0xf] %vm3473_vm7, %v4010_v9  ;;  %v3303_v62 = vadd.f32 %v5838_v17, %v3264_v53  ;;  %v3265_v15 = vmul.f32 %v4506_v4, %v5833_v39 }
 0x215   : > { %3491 = vst.msk [vmem:[%s5851_s20 + $0x44] sm:$0xf] %vm3473_vm7, %v4008_v33  ;;  %v3301_v38 = vadd.f32 %v5838_v17, %v3262_v41  ;;  %v3263_v40 = vmul.f32 %v4507_v52, %v5833_v39 }
 0x216   : > { %v3335_v29 = vmax.f32 %v3303_v62, 0.0  ;;  %v3304_v32 = vadd.f32 %v5838_v17, %v3265_v15 }
 0x217   : > { %v3333_v8 = vmax.f32 %v3301_v38, 0.0  ;;  %v3302_v16 = vadd.f32 %v5838_v17, %v3263_v40  ;;  %v4340_v10 = vpop.f32.mrb[24].mxu1  ;;  %v4476_v21 = vpop.f32.mrb[24].mxu0 }
 0x218   : > { %v4013_v34 = vpack.c.bf16 %v3335_v29, %v3335_v29  ;;  %v3336_v6 = vmax.f32 %v3304_v32, 0.0  ;;  %v4508_v19 = vadd.f32 %v4476_v21, %v4340_v10  ;;  %v2298_v23 = vpop.f32.mrb[25].mxu1  ;;  %v3172_v12 = vpop.f32.mrb[25].mxu0 }
 0x219   : > { %v4011_v49 = vpack.c.bf16 %v3333_v8, %v3333_v8  ;;  %v3334_v2 = vmax.f32 %v3302_v16, 0.0  ;;  %v4509_v44 = vadd.f32 %v3172_v12, %v2298_v23  ;;  %v4341_v25 = vpop.f32.mrb[26].mxu1  ;;  %v4477_v31 = vpop.f32.mrb[26].mxu0 }
 0x21a   : > { %3496 = vst.msk [vmem:[%s5851_s20 + $0x58] sm:$0xf] %vm3473_vm7, %v4013_v34  ;;  %v4014_v50 = vpack.c.bf16 %v3336_v6, %v3336_v6  ;;  %v3268_v36 = vmul.f32 %v4508_v19, %v5833_v39  ;;  %v4510_v58 = vadd.f32 %v4477_v31, %v4341_v25  ;;  %v2301_v24 = vpop.f32.mrb[27].mxu1  ;;  %v3175_v37 = vpop.f32.mrb[27].mxu0 }
 0x21b   : > { %3494 = vst.msk [vmem:[%s5851_s20 + $0x50] sm:$0xf] %vm3473_vm7, %v4011_v49  ;;  %v4012_v28 = vpack.c.bf16 %v3334_v2, %v3334_v2  ;;  %v3266_v35 = vmul.f32 %v4509_v44, %v5833_v39  ;;  %v4511_v54 = vadd.f32 %v3175_v37, %v2301_v24 }
 0x21c   : > { %3497 = vst.msk [vmem:[%s5851_s20 + $0x5c] sm:$0xf] %vm3473_vm7, %v4014_v50  ;;  %v3307_v18 = vadd.f32 %v5838_v17, %v3268_v36  ;;  %v3269_v48 = vmul.f32 %v4510_v58, %v5833_v39 }
 0x21d   : > { %3495 = vst.msk [vmem:[%s5851_s20 + $0x54] sm:$0xf] %vm3473_vm7, %v4012_v28  ;;  %v3305_v45 = vadd.f32 %v5838_v17, %v3266_v35  ;;  %v3267_v30 = vmul.f32 %v4511_v54, %v5833_v39 }
 0x21e   : > { %v3339_v3 = vmax.f32 %v3307_v18, 0.0  ;;  %v3308_v51 = vadd.f32 %v5838_v17, %v3269_v48 }
 0x21f   : > { %v3337_v56 = vmax.f32 %v3305_v45, 0.0  ;;  %v3306_v14 = vadd.f32 %v5838_v17, %v3267_v30  ;;  %v4344_v46 = vpop.f32.mrb[28].mxu1  ;;  %v4480_v57 = vpop.f32.mrb[28].mxu0 }
 0x220   : > { %v4017_v42 = vpack.c.bf16 %v3339_v3, %v3339_v3  ;;  %v3340_v1 = vmax.f32 %v3308_v51, 0.0  ;;  %v4512_v13 = vadd.f32 %v4480_v57, %v4344_v46  ;;  %v2314_v59 = vpop.f32.mrb[29].mxu1  ;;  %v3188_v0 = vpop.f32.mrb[29].mxu0 }
 0x221   : > { %v4015_v43 = vpack.c.bf16 %v3337_v56, %v3337_v56  ;;  %v3338_v20 = vmax.f32 %v3306_v14, 0.0  ;;  %v4513_v22 = vadd.f32 %v3188_v0, %v2314_v59  ;;  %v4345_v60 = vpop.f32.mrb[30].mxu1  ;;  %v4481_v26 = vpop.f32.mrb[30].mxu0 }
 0x222   : > { %3500 = vst.msk [vmem:[%s5851_s20 + $0x68] sm:$0xf] %vm3473_vm7, %v4017_v42  ;;  %v4018_v61 = vpack.c.bf16 %v3340_v1, %v3340_v1  ;;  %v3272_v47 = vmul.f32 %v4512_v13, %v5833_v39  ;;  %v4514_v11 = vadd.f32 %v4481_v26, %v4345_v60  ;;  %v2317_v7 = vpop.f32.mrb[31].mxu1  ;;  %v3191_v55 = vpop.f32.mrb[31].mxu0 }
 0x223   : > { %3498 = vst.msk [vmem:[%s5851_s20 + $0x60] sm:$0xf] %vm3473_vm7, %v4015_v43  ;;  %v4016_v63 = vpack.c.bf16 %v3338_v20, %v3338_v20  ;;  %v3270_v9 = vmul.f32 %v4513_v22, %v5833_v39  ;;  %v4515_v53 = vadd.f32 %v3191_v55, %v2317_v7 }
 0x224   : > { %3501 = vst.msk [vmem:[%s5851_s20 + $0x6c] sm:$0xf] %vm3473_vm7, %v4018_v61  ;;  %v3311_v4 = vadd.f32 %v5838_v17, %v3272_v47  ;;  %v3273_v5 = vmul.f32 %v4514_v11, %v5833_v39 }
 0x225   : > { %3499 = vst.msk [vmem:[%s5851_s20 + $0x64] sm:$0xf] %vm3473_vm7, %v4016_v63  ;;  %v3309_v27 = vadd.f32 %v5838_v17, %v3270_v9  ;;  %v3271_v33 = vmul.f32 %v4515_v53, %v5833_v39 }
 0x226   : > { %v3343_v41 = vmax.f32 %v3311_v4, 0.0  ;;  %v3312_v52 = vadd.f32 %v5838_v17, %v3273_v5 }
 0x227   : > { %v3341_v62 = vmax.f32 %v3309_v27, 0.0  ;;  %v3310_v15 = vadd.f32 %v5838_v17, %v3271_v33 }
 0x228   : > { %v4021_v38 = vpack.c.bf16 %v3343_v41, %v3343_v41  ;;  %v3344_v40 = vmax.f32 %v3312_v52, 0.0 }
 0x229   : > { %v4019_v29 = vpack.c.bf16 %v3341_v62, %v3341_v62  ;;  %v3342_v32 = vmax.f32 %v3310_v15, 0.0 }
 0x22a   : > { %3504 = vst.msk [vmem:[%s5851_s20 + $0x78] sm:$0xf] %vm3473_vm7, %v4021_v38  ;;  %v4022_v8 = vpack.c.bf16 %v3344_v40, %v3344_v40 }
 0x22b   : > { %3502 = vst.msk [vmem:[%s5851_s20 + $0x70] sm:$0xf] %vm3473_vm7, %v4019_v29  ;;  %v4020_v16 = vpack.c.bf16 %v3342_v32, %v3342_v32 }
 0x22c   : > { %3505 = vst.msk [vmem:[%s5851_s20 + $0x7c] sm:$0xf] %vm3473_vm7, %v4022_v8 }
 0x22d   : > { %3503 = vst.msk [vmem:[%s5851_s20 + $0x74] sm:$0xf] %vm3473_vm7, %v4020_v16 }
 0x22e PF: > { %s16_s23 = sadd.s32 1, %s4820_s23   ;;  %s6071_s21 = smov %s4816_s22 }
 0x22f   : > { %p13_p5 = scmp.ge.s32.totalorder %s16_s23, 4   ;;  %s6072_s22 = smov %s6074_s24 }
 0x231   :  { %15 = sbr.rel (!%p13_p5) target bundleno = 2 (0x2), region = 97 }

</bundles_post_ra>
